<compile_context>
chip_gen: v5e
topology: v5e:2x2
jax: 0.10.0
libtpu: 0.0.40
codegen_flags: <defaults>
</compile_context>

<pallas_src>
import functools

import jax
import jax.numpy as jnp
from jax import lax
from jax.experimental import pallas as pl
from jax.experimental.pallas import tpu as pltpu

BN_EPS = 1e-5
LEAKY_SLOPE = 0.1


def _hardswish(v):
    return v * jnp.clip(v + 3.0, 0.0, 6.0) * (1.0 / 6.0)


def _csp_kernel(x_ref,
                w_cv1_ref, b_cv1_ref,
                w_m1_ref, b_m1_ref,
                w_m2_ref, b_m2_ref,
                w_y1_ref, b_y1_ref,
                w_y2_ref, b_y2_ref,
                w_cv4_ref, b_cv4_ref,
                out_ref, *, h, w):
    # All activations are channel-major: (C, H*W), H*W on lanes.
    hw = h * w
    c_ = w_cv1_ref.shape[0]

    def dot(a, b):
        return jnp.dot(a, b, preferred_element_type=jnp.float32)

    x = x_ref[0]                                                  # (c1, hw)

    # cv1: 1x1 conv + folded BN + Hardswish
    a = _hardswish(dot(w_cv1_ref[...], x) + b_cv1_ref[...])       # (c_, hw)

    # m[0].cv1: 1x1 conv + folded BN + Hardswish
    bch = _hardswish(dot(w_m1_ref[...], a) + b_m1_ref[...])       # (c_, hw)

    # m[0].cv2: 3x3 conv (stride 1, pad 1) + folded BN + Hardswish.
    # Implemented as 9 masked lane-rolls of the flattened (c_, H*W) activation,
    # each followed by a (c_, c_) @ (c_, hw) accumulate.
    pos = lax.broadcasted_iota(jnp.int32, (1, hw), 1)
    col = pos % w
    acc = jnp.zeros((c_, hw), jnp.float32)
    for ky in range(3):
        for kx in range(3):
            k = ky * 3 + kx
            delta = (ky - 1) * w + (kx - 1)
            if delta == 0:
                shifted = bch
            else:
                shifted = pltpu.roll(bch, shift=(-delta) % hw, axis=1)
            valid = ((pos + delta >= 0) & (pos + delta < hw) &
                     (col + (kx - 1) >= 0) & (col + (kx - 1) < w))
            patch = jnp.where(valid, shifted, 0.0)
            acc = acc + dot(w_m2_ref[k], patch)
    cch = _hardswish(acc + b_m2_ref[...])                         # (c_, hw)

    m_out = a + cch                                               # Bottleneck shortcut

    # cv3 / cv2 (bias-free) with the post-concat BN folded into each branch,
    # then LeakyReLU(0.1).
    y1 = dot(w_y1_ref[...], m_out) + b_y1_ref[...]
    y2 = dot(w_y2_ref[...], x) + b_y2_ref[...]
    z1 = jnp.maximum(y1, LEAKY_SLOPE * y1)
    z2 = jnp.maximum(y2, LEAKY_SLOPE * y2)

    # cv4: 1x1 conv over the (virtual) concat + folded BN + Hardswish.
    # Split the weight columns instead of materializing cat([z1, z2]).
    w_cv4 = w_cv4_ref[...]
    out = _hardswish(dot(w_cv4[:, :c_], z1) + dot(w_cv4[:, c_:], z2)
                     + b_cv4_ref[...])                            # (c2, hw)
    out_ref[0] = out.astype(out_ref.dtype)


def bottleneck_csp(x_nchw, params):
    """BottleneckCSP forward. x_nchw: (N, C1, H, W) f32 -> (N, C2, H, W) f32."""
    n, c1, h, w = x_nchw.shape
    c2 = params['cv4_w'].shape[0]
    c_ = params['cv1_w'].shape[0]
    hw = h * w

    # ---- fold every eval-mode BatchNorm into the adjacent bias-free conv ----
    def fold(gamma, beta, mean, var):
        scale = gamma * lax.rsqrt(var + BN_EPS)
        return scale, beta - mean * scale

    def fold_1x1(w_oi11, bn):
        s, b = fold(*bn)
        return ((w_oi11[:, :, 0, 0] * s[:, None]).astype(jnp.float32),
                b[:, None].astype(jnp.float32))

    w_cv1, b_cv1 = fold_1x1(params['cv1_w'], params['cv1_bn'])
    w_m1, b_m1 = fold_1x1(params['m0_cv1_w'], params['m0_cv1_bn'])

    # 3x3 conv of m[0].cv2: (9, c_out, c_in) with tap index k = ky*3 + kx.
    s_m2, bias_m2 = fold(*params['m0_cv2_bn'])
    w_m2 = jnp.transpose(params['m0_cv2_w'], (2, 3, 0, 1)).reshape(9, c_, c_)
    w_m2 = (w_m2 * s_m2[None, :, None]).astype(jnp.float32)
    b_m2 = bias_m2[:, None].astype(jnp.float32)

    # cv3 / cv2 (no bias) with the post-concat BN folded per branch.
    s_bn, bias_bn = fold(*params['bn'])
    w_y1 = (params['cv3_w'][:, :, 0, 0] * s_bn[:c_, None]).astype(jnp.float32)
    b_y1 = bias_bn[:c_, None].astype(jnp.float32)
    w_y2 = (params['cv2_w'][:, :, 0, 0] * s_bn[c_:, None]).astype(jnp.float32)
    b_y2 = bias_bn[c_:, None].astype(jnp.float32)

    w_cv4, b_cv4 = fold_1x1(params['cv4_w'], params['cv4_bn'])

    # Free (metadata-only) reshape: stay channel-major, H*W on lanes. No transpose,
    # no HBM-side spatial padding.
    x_flat = x_nchw.reshape(n, c1, hw).astype(jnp.float32)

    kern = functools.partial(_csp_kernel, h=h, w=w)
    full2 = lambda i: (0, 0)
    full3 = lambda i: (0, 0, 0)

    out = pl.pallas_call(
        kern,
        out_shape=jax.ShapeDtypeStruct((n, c2, hw), jnp.float32),
        grid_spec=pltpu.PrefetchScalarGridSpec(
            num_scalar_prefetch=0,
            grid=(n,),
            in_specs=[
                pl.BlockSpec((1, c1, hw), lambda i: (i, 0, 0)),
                pl.BlockSpec((c_, c1), full2),          # w_cv1
                pl.BlockSpec((c_, 1), full2),           # b_cv1
                pl.BlockSpec((c_, c_), full2),          # w_m1
                pl.BlockSpec((c_, 1), full2),           # b_m1
                pl.BlockSpec((9, c_, c_), full3),       # w_m2 (3x3 taps)
                pl.BlockSpec((c_, 1), full2),           # b_m2
                pl.BlockSpec((c_, c_), full2),          # w_y1 (cv3 + bn[:c_])
                pl.BlockSpec((c_, 1), full2),           # b_y1
                pl.BlockSpec((c_, c1), full2),          # w_y2 (cv2 + bn[c_:])
                pl.BlockSpec((c_, 1), full2),           # b_y2
                pl.BlockSpec((c2, 2 * c_), full2),      # w_cv4
                pl.BlockSpec((c2, 1), full2),           # b_cv4
            ],
            out_specs=pl.BlockSpec((1, c2, hw), lambda i: (i, 0, 0)),
        ),
        compiler_params=pltpu.CompilerParams(
            dimension_semantics=("parallel",)),
    )(x_flat, w_cv1, b_cv1, w_m1, b_m1, w_m2, b_m2,
      w_y1, b_y1, w_y2, b_y2, w_cv4, b_cv4)

    return out.reshape(n, c2, h, w)   # free reshape back to NCHW


# ----------------------------- pure-JAX reference -----------------------------
def _reference(x, p):
    def conv(x, w, pad):
        return lax.conv_general_dilated(
            x, w, window_strides=(1, 1), padding=pad,
            dimension_numbers=("NCHW", "OIHW", "NCHW"))

    def bn(x, g, b, m, v):
        scale = g * lax.rsqrt(v + BN_EPS)
        return ((x - m[None, :, None, None]) * scale[None, :, None, None]
                + b[None, :, None, None])

    def hs(x):
        return x * jnp.clip(x + 3.0, 0.0, 6.0) / 6.0

    p00 = ((0, 0), (0, 0))
    a = hs(bn(conv(x, p['cv1_w'], p00), *p['cv1_bn']))
    b_ = hs(bn(conv(a, p['m0_cv1_w'], p00), *p['m0_cv1_bn']))
    c = hs(bn(conv(b_, p['m0_cv2_w'], ((1, 1), (1, 1))), *p['m0_cv2_bn']))
    m_out = a + c
    y1 = conv(m_out, p['cv3_w'], p00)
    y2 = conv(x, p['cv2_w'], p00)
    cat = bn(jnp.concatenate([y1, y2], axis=1), *p['bn'])
    cat = jnp.where(cat >= 0, cat, LEAKY_SLOPE * cat)
    return hs(bn(conv(cat, p['cv4_w'], p00), *p['cv4_bn']))


if __name__ == "__main__":
    key = jax.random.PRNGKey(0)
    N, C1, C2, H, W = 2, 4, 8, 16, 16
    c_ = int(C2 * 0.5)

    ks = iter(jax.random.split(key, 40))

    def nrm(shape, scale=0.3):
        return scale * jax.random.normal(next(ks), shape, dtype=jnp.float32)

    def bn_params(c):
        return (1.0 + 0.1 * jax.random.normal(next(ks), (c,), dtype=jnp.float32),
                0.1 * jax.random.normal(next(ks), (c,), dtype=jnp.float32),
                0.1 * jax.random.normal(next(ks), (c,), dtype=jnp.float32),
                1.0 + 0.1 * jax.random.uniform(next(ks), (c,), dtype=jnp.float32))

    x = jax.random.normal(next(ks), (N, C1, H, W), dtype=jnp.float32)

    params = {
        'cv1_w': nrm((c_, C1, 1, 1)), 'cv1_bn': bn_params(c_),
        'cv2_w': nrm((c_, C1, 1, 1)),
        'cv3_w': nrm((c_, c_, 1, 1)),
        'cv4_w': nrm((C2, 2 * c_, 1, 1)), 'cv4_bn': bn_params(C2),
        'bn': bn_params(2 * c_),
        'm0_cv1_w': nrm((c_, c_, 1, 1)), 'm0_cv1_bn': bn_params(c_),
        'm0_cv2_w': nrm((c_, c_, 3, 3)), 'm0_cv2_bn': bn_params(c_),
    }

    out = bottleneck_csp(x, params)
    out = jax.block_until_ready(out)

    ref = _reference(x, params)
    assert out.shape == (N, C2, H, W)
    max_err = float(jnp.max(jnp.abs(out - ref)))
    assert jnp.allclose(out, ref, atol=2e-4, rtol=2e-4), \
        f"mismatch vs reference, max abs err {max_err}"

    print("KERNEL_OK")
</pallas_src>

<mosaic_0001>
module attributes {stable_mosaic.version = 11 : i64} {
  func.func @_csp_kernel(%arg0: i32, %arg1: memref<1x4x256xf32, #tpu.memory_space<vmem>>, %arg2: memref<4x4xf32, #tpu.memory_space<vmem>>, %arg3: memref<4x1xf32, #tpu.memory_space<vmem>>, %arg4: memref<4x4xf32, #tpu.memory_space<vmem>>, %arg5: memref<4x1xf32, #tpu.memory_space<vmem>>, %arg6: memref<9x4x4xf32, #tpu.memory_space<vmem>>, %arg7: memref<4x1xf32, #tpu.memory_space<vmem>>, %arg8: memref<4x4xf32, #tpu.memory_space<vmem>>, %arg9: memref<4x1xf32, #tpu.memory_space<vmem>>, %arg10: memref<4x4xf32, #tpu.memory_space<vmem>>, %arg11: memref<4x1xf32, #tpu.memory_space<vmem>>, %arg12: memref<8x8xf32, #tpu.memory_space<vmem>>, %arg13: memref<8x1xf32, #tpu.memory_space<vmem>>, %arg14: memref<1x8x256xf32, #tpu.memory_space<vmem>>) attributes {dimension_semantics = [#tpu.dimension_semantics<parallel>], iteration_bounds = array<i64: 2>, scalar_prefetch = 0 : i64, scratch_operands = 0 : i64, tpu.core_type = #tpu.core_type<tc>, window_params = [{transform_indices = @transform_0, window_bounds = array<i64: 1, 4, 256>}, {pipeline_mode = #tpu.pipeline_mode<synchronous>, transform_indices = @transform_1, window_bounds = array<i64: 4, 4>}, {pipeline_mode = #tpu.pipeline_mode<synchronous>, transform_indices = @transform_2, window_bounds = array<i64: 4, 1>}, {pipeline_mode = #tpu.pipeline_mode<synchronous>, transform_indices = @transform_3, window_bounds = array<i64: 4, 4>}, {pipeline_mode = #tpu.pipeline_mode<synchronous>, transform_indices = @transform_4, window_bounds = array<i64: 4, 1>}, {pipeline_mode = #tpu.pipeline_mode<synchronous>, transform_indices = @transform_5, window_bounds = array<i64: 9, 4, 4>}, {pipeline_mode = #tpu.pipeline_mode<synchronous>, transform_indices = @transform_6, window_bounds = array<i64: 4, 1>}, {pipeline_mode = #tpu.pipeline_mode<synchronous>, transform_indices = @transform_7, window_bounds = array<i64: 4, 4>}, {pipeline_mode = #tpu.pipeline_mode<synchronous>, transform_indices = @transform_8, window_bounds = array<i64: 4, 1>}, {pipeline_mode = #tpu.pipeline_mode<synchronous>, transform_indices = @transform_9, window_bounds = array<i64: 4, 4>}, {pipeline_mode = #tpu.pipeline_mode<synchronous>, transform_indices = @transform_10, window_bounds = array<i64: 4, 1>}, {pipeline_mode = #tpu.pipeline_mode<synchronous>, transform_indices = @transform_11, window_bounds = array<i64: 8, 8>}, {pipeline_mode = #tpu.pipeline_mode<synchronous>, transform_indices = @transform_12, window_bounds = array<i64: 8, 1>}, {transform_indices = @transform_13, window_bounds = array<i64: 1, 8, 256>}]} {
    %c0 = arith.constant 0 : index
    %c0_0 = arith.constant 0 : index
    %c0_1 = arith.constant 0 : index
    %0 = vector.load %arg1[%c0, %c0_0, %c0_1] : memref<1x4x256xf32, #tpu.memory_space<vmem>>, vector<1x4x256xf32>
    %1 = vector.shape_cast %0 : vector<1x4x256xf32> to vector<4x256xf32>
    %c0_2 = arith.constant 0 : index
    %c0_3 = arith.constant 0 : index
    %2 = vector.load %arg2[%c0_2, %c0_3] : memref<4x4xf32, #tpu.memory_space<vmem>>, vector<4x4xf32>
    %cst = arith.constant dense<0.000000e+00> : vector<4x256xf32>
    %3 = tpu.matmul %2, %1, %cst {dimension_numbers = #tpu.dot_dimension_numbers<[1], [0], [0], [1], [0, 0, 1, 1], [], []>} : vector<4x4xf32>, vector<4x256xf32>, vector<4x256xf32> -> vector<4x256xf32>
    %c0_4 = arith.constant 0 : index
    %c0_5 = arith.constant 0 : index
    %4 = vector.load %arg3[%c0_4, %c0_5] : memref<4x1xf32, #tpu.memory_space<vmem>>, vector<4x1xf32>
    %5 = vector.broadcast %4 : vector<4x1xf32> to vector<4x256xf32>
    %6 = arith.addf %3, %5 : vector<4x256xf32>
    %cst_6 = arith.constant 3.000000e+00 : f32
    %7 = vector.broadcast %cst_6 : f32 to vector<4x256xf32>
    %8 = arith.addf %6, %7 : vector<4x256xf32>
    %cst_7 = arith.constant 0.000000e+00 : f32
    %cst_8 = arith.constant 6.000000e+00 : f32
    %9 = vector.broadcast %cst_7 : f32 to vector<4x256xf32>
    %10 = arith.maximumf %9, %8 : vector<4x256xf32>
    %11 = vector.broadcast %cst_8 : f32 to vector<4x256xf32>
    %12 = arith.minimumf %11, %10 : vector<4x256xf32>
    %13 = arith.mulf %6, %12 : vector<4x256xf32>
    %cst_9 = arith.constant 0.166666672 : f32
    %14 = vector.broadcast %cst_9 : f32 to vector<4x256xf32>
    %15 = arith.mulf %13, %14 : vector<4x256xf32>
    %c0_10 = arith.constant 0 : index
    %c0_11 = arith.constant 0 : index
    %16 = vector.load %arg4[%c0_10, %c0_11] : memref<4x4xf32, #tpu.memory_space<vmem>>, vector<4x4xf32>
    %cst_12 = arith.constant dense<0.000000e+00> : vector<4x256xf32>
    %17 = tpu.matmul %16, %15, %cst_12 {dimension_numbers = #tpu.dot_dimension_numbers<[1], [0], [0], [1], [0, 0, 1, 1], [], []>} : vector<4x4xf32>, vector<4x256xf32>, vector<4x256xf32> -> vector<4x256xf32>
    %c0_13 = arith.constant 0 : index
    %c0_14 = arith.constant 0 : index
    %18 = vector.load %arg5[%c0_13, %c0_14] : memref<4x1xf32, #tpu.memory_space<vmem>>, vector<4x1xf32>
    %19 = vector.broadcast %18 : vector<4x1xf32> to vector<4x256xf32>
    %20 = arith.addf %17, %19 : vector<4x256xf32>
    %cst_15 = arith.constant 3.000000e+00 : f32
    %21 = vector.broadcast %cst_15 : f32 to vector<4x256xf32>
    %22 = arith.addf %20, %21 : vector<4x256xf32>
    %cst_16 = arith.constant 0.000000e+00 : f32
    %cst_17 = arith.constant 6.000000e+00 : f32
    %23 = vector.broadcast %cst_16 : f32 to vector<4x256xf32>
    %24 = arith.maximumf %23, %22 : vector<4x256xf32>
    %25 = vector.broadcast %cst_17 : f32 to vector<4x256xf32>
    %26 = arith.minimumf %25, %24 : vector<4x256xf32>
    %27 = arith.mulf %20, %26 : vector<4x256xf32>
    %cst_18 = arith.constant 0.166666672 : f32
    %28 = vector.broadcast %cst_18 : f32 to vector<4x256xf32>
    %29 = arith.mulf %27, %28 : vector<4x256xf32>
    %30 = tpu.iota {dimensions = array<i32: 1>} : vector<1x256xi32>
    %c16_i32 = arith.constant 16 : i32
    %c0_i32 = arith.constant 0 : i32
    %31 = arith.cmpi eq, %c16_i32, %c0_i32 : i32
    %c1_i32 = arith.constant 1 : i32
    %32 = arith.select %31, %c1_i32, %c16_i32 : i32
    %33 = vector.broadcast %32 : i32 to vector<1x256xi32>
    %34 = arith.remsi %30, %33 : vector<1x256xi32>
    %c0_i32_19 = arith.constant 0 : i32
    %35 = vector.broadcast %c0_i32_19 : i32 to vector<1x256xi32>
    %36 = arith.cmpi ne, %34, %35 : vector<1x256xi32>
    %c0_i32_20 = arith.constant 0 : i32
    %37 = vector.broadcast %c0_i32_20 : i32 to vector<1x256xi32>
    %38 = arith.cmpi slt, %34, %37 : vector<1x256xi32>
    %c0_i32_21 = arith.constant 0 : i32
    %39 = arith.cmpi slt, %32, %c0_i32_21 : i32
    %40 = vector.broadcast %39 : i1 to vector<1x256xi1>
    %41 = vector.broadcast %40 : vector<1x256xi1> to vector<1x256xi1>
    %42 = arith.xori %38, %41 : vector<1x256xi1>
    %43 = arith.andi %42, %36 : vector<1x256xi1>
    %44 = vector.broadcast %32 : i32 to vector<1x256xi32>
    %45 = arith.addi %34, %44 : vector<1x256xi32>
    %46 = arith.select %43, %45, %34 : vector<1x256xi1>, vector<1x256xi32>
    %cst_22 = arith.constant 0.000000e+00 : f32
    %47 = vector.broadcast %cst_22 : f32 to vector<4x256xf32>
    %c17_i32 = arith.constant 17 : i32
    %48 = tpu.dynamic_rotate %29 by %c17_i32 dim 1 : vector<4x256xf32>, i32 -> vector<4x256xf32>
    %c-17_i32 = arith.constant -17 : i32
    %49 = vector.broadcast %c-17_i32 : i32 to vector<1x256xi32>
    %50 = arith.addi %30, %49 : vector<1x256xi32>
    %c0_i32_23 = arith.constant 0 : i32
    %51 = vector.broadcast %c0_i32_23 : i32 to vector<1x256xi32>
    %52 = arith.cmpi sge, %50, %51 : vector<1x256xi32>
    %c-17_i32_24 = arith.constant -17 : i32
    %53 = vector.broadcast %c-17_i32_24 : i32 to vector<1x256xi32>
    %54 = arith.addi %30, %53 : vector<1x256xi32>
    %c256_i32 = arith.constant 256 : i32
    %55 = vector.broadcast %c256_i32 : i32 to vector<1x256xi32>
    %56 = arith.cmpi slt, %54, %55 : vector<1x256xi32>
    %57 = arith.andi %52, %56 : vector<1x256xi1>
    %c-1_i32 = arith.constant -1 : i32
    %58 = vector.broadcast %c-1_i32 : i32 to vector<1x256xi32>
    %59 = arith.addi %46, %58 : vector<1x256xi32>
    %c0_i32_25 = arith.constant 0 : i32
    %60 = vector.broadcast %c0_i32_25 : i32 to vector<1x256xi32>
    %61 = arith.cmpi sge, %59, %60 : vector<1x256xi32>
    %62 = arith.andi %57, %61 : vector<1x256xi1>
    %c-1_i32_26 = arith.constant -1 : i32
    %63 = vector.broadcast %c-1_i32_26 : i32 to vector<1x256xi32>
    %64 = arith.addi %46, %63 : vector<1x256xi32>
    %c16_i32_27 = arith.constant 16 : i32
    %65 = vector.broadcast %c16_i32_27 : i32 to vector<1x256xi32>
    %66 = arith.cmpi slt, %64, %65 : vector<1x256xi32>
    %67 = arith.andi %62, %66 : vector<1x256xi1>
    %cst_28 = arith.constant 0.000000e+00 : f32
    %68 = vector.shape_cast %67 : vector<1x256xi1> to vector<1x256xi1>
    %69 = vector.broadcast %68 : vector<1x256xi1> to vector<4x256xi1>
    %70 = vector.broadcast %cst_28 : f32 to vector<4x256xf32>
    %71 = arith.select %69, %48, %70 : vector<4x256xi1>, vector<4x256xf32>
    %c0_29 = arith.constant 0 : index
    %c0_30 = arith.constant 0 : index
    %c0_31 = arith.constant 0 : index
    %72 = vector.load %arg6[%c0_29, %c0_30, %c0_31] : memref<9x4x4xf32, #tpu.memory_space<vmem>>, vector<1x4x4xf32>
    %73 = vector.shape_cast %72 : vector<1x4x4xf32> to vector<4x4xf32>
    %cst_32 = arith.constant dense<0.000000e+00> : vector<4x256xf32>
    %74 = tpu.matmul %73, %71, %cst_32 {dimension_numbers = #tpu.dot_dimension_numbers<[1], [0], [0], [1], [0, 0, 1, 1], [], []>} : vector<4x4xf32>, vector<4x256xf32>, vector<4x256xf32> -> vector<4x256xf32>
    %75 = arith.addf %47, %74 : vector<4x256xf32>
    %c16_i32_33 = arith.constant 16 : i32
    %76 = tpu.dynamic_rotate %29 by %c16_i32_33 dim 1 : vector<4x256xf32>, i32 -> vector<4x256xf32>
    %c-16_i32 = arith.constant -16 : i32
    %77 = vector.broadcast %c-16_i32 : i32 to vector<1x256xi32>
    %78 = arith.addi %30, %77 : vector<1x256xi32>
    %c0_i32_34 = arith.constant 0 : i32
    %79 = vector.broadcast %c0_i32_34 : i32 to vector<1x256xi32>
    %80 = arith.cmpi sge, %78, %79 : vector<1x256xi32>
    %c-16_i32_35 = arith.constant -16 : i32
    %81 = vector.broadcast %c-16_i32_35 : i32 to vector<1x256xi32>
    %82 = arith.addi %30, %81 : vector<1x256xi32>
    %c256_i32_36 = arith.constant 256 : i32
    %83 = vector.broadcast %c256_i32_36 : i32 to vector<1x256xi32>
    %84 = arith.cmpi slt, %82, %83 : vector<1x256xi32>
    %85 = arith.andi %80, %84 : vector<1x256xi1>
    %c0_i32_37 = arith.constant 0 : i32
    %86 = vector.broadcast %c0_i32_37 : i32 to vector<1x256xi32>
    %87 = arith.addi %46, %86 : vector<1x256xi32>
    %c0_i32_38 = arith.constant 0 : i32
    %88 = vector.broadcast %c0_i32_38 : i32 to vector<1x256xi32>
    %89 = arith.cmpi sge, %87, %88 : vector<1x256xi32>
    %90 = arith.andi %85, %89 : vector<1x256xi1>
    %c0_i32_39 = arith.constant 0 : i32
    %91 = vector.broadcast %c0_i32_39 : i32 to vector<1x256xi32>
    %92 = arith.addi %46, %91 : vector<1x256xi32>
    %c16_i32_40 = arith.constant 16 : i32
    %93 = vector.broadcast %c16_i32_40 : i32 to vector<1x256xi32>
    %94 = arith.cmpi slt, %92, %93 : vector<1x256xi32>
    %95 = arith.andi %90, %94 : vector<1x256xi1>
    %cst_41 = arith.constant 0.000000e+00 : f32
    %96 = vector.shape_cast %95 : vector<1x256xi1> to vector<1x256xi1>
    %97 = vector.broadcast %96 : vector<1x256xi1> to vector<4x256xi1>
    %98 = vector.broadcast %cst_41 : f32 to vector<4x256xf32>
    %99 = arith.select %97, %76, %98 : vector<4x256xi1>, vector<4x256xf32>
    %c1 = arith.constant 1 : index
    %c0_42 = arith.constant 0 : index
    %c0_43 = arith.constant 0 : index
    %100 = vector.load %arg6[%c1, %c0_42, %c0_43] : memref<9x4x4xf32, #tpu.memory_space<vmem>>, vector<1x4x4xf32>
    %101 = vector.shape_cast %100 : vector<1x4x4xf32> to vector<4x4xf32>
    %cst_44 = arith.constant dense<0.000000e+00> : vector<4x256xf32>
    %102 = tpu.matmul %101, %99, %cst_44 {dimension_numbers = #tpu.dot_dimension_numbers<[1], [0], [0], [1], [0, 0, 1, 1], [], []>} : vector<4x4xf32>, vector<4x256xf32>, vector<4x256xf32> -> vector<4x256xf32>
    %103 = arith.addf %75, %102 : vector<4x256xf32>
    %c15_i32 = arith.constant 15 : i32
    %104 = tpu.dynamic_rotate %29 by %c15_i32 dim 1 : vector<4x256xf32>, i32 -> vector<4x256xf32>
    %c-15_i32 = arith.constant -15 : i32
    %105 = vector.broadcast %c-15_i32 : i32 to vector<1x256xi32>
    %106 = arith.addi %30, %105 : vector<1x256xi32>
    %c0_i32_45 = arith.constant 0 : i32
    %107 = vector.broadcast %c0_i32_45 : i32 to vector<1x256xi32>
    %108 = arith.cmpi sge, %106, %107 : vector<1x256xi32>
    %c-15_i32_46 = arith.constant -15 : i32
    %109 = vector.broadcast %c-15_i32_46 : i32 to vector<1x256xi32>
    %110 = arith.addi %30, %109 : vector<1x256xi32>
    %c256_i32_47 = arith.constant 256 : i32
    %111 = vector.broadcast %c256_i32_47 : i32 to vector<1x256xi32>
    %112 = arith.cmpi slt, %110, %111 : vector<1x256xi32>
    %113 = arith.andi %108, %112 : vector<1x256xi1>
    %c1_i32_48 = arith.constant 1 : i32
    %114 = vector.broadcast %c1_i32_48 : i32 to vector<1x256xi32>
    %115 = arith.addi %46, %114 : vector<1x256xi32>
    %c0_i32_49 = arith.constant 0 : i32
    %116 = vector.broadcast %c0_i32_49 : i32 to vector<1x256xi32>
    %117 = arith.cmpi sge, %115, %116 : vector<1x256xi32>
    %118 = arith.andi %113, %117 : vector<1x256xi1>
    %c1_i32_50 = arith.constant 1 : i32
    %119 = vector.broadcast %c1_i32_50 : i32 to vector<1x256xi32>
    %120 = arith.addi %46, %119 : vector<1x256xi32>
    %c16_i32_51 = arith.constant 16 : i32
    %121 = vector.broadcast %c16_i32_51 : i32 to vector<1x256xi32>
    %122 = arith.cmpi slt, %120, %121 : vector<1x256xi32>
    %123 = arith.andi %118, %122 : vector<1x256xi1>
    %cst_52 = arith.constant 0.000000e+00 : f32
    %124 = vector.shape_cast %123 : vector<1x256xi1> to vector<1x256xi1>
    %125 = vector.broadcast %124 : vector<1x256xi1> to vector<4x256xi1>
    %126 = vector.broadcast %cst_52 : f32 to vector<4x256xf32>
    %127 = arith.select %125, %104, %126 : vector<4x256xi1>, vector<4x256xf32>
    %c2 = arith.constant 2 : index
    %c0_53 = arith.constant 0 : index
    %c0_54 = arith.constant 0 : index
    %128 = vector.load %arg6[%c2, %c0_53, %c0_54] : memref<9x4x4xf32, #tpu.memory_space<vmem>>, vector<1x4x4xf32>
    %129 = vector.shape_cast %128 : vector<1x4x4xf32> to vector<4x4xf32>
    %cst_55 = arith.constant dense<0.000000e+00> : vector<4x256xf32>
    %130 = tpu.matmul %129, %127, %cst_55 {dimension_numbers = #tpu.dot_dimension_numbers<[1], [0], [0], [1], [0, 0, 1, 1], [], []>} : vector<4x4xf32>, vector<4x256xf32>, vector<4x256xf32> -> vector<4x256xf32>
    %131 = arith.addf %103, %130 : vector<4x256xf32>
    %c1_i32_56 = arith.constant 1 : i32
    %132 = tpu.dynamic_rotate %29 by %c1_i32_56 dim 1 : vector<4x256xf32>, i32 -> vector<4x256xf32>
    %c-1_i32_57 = arith.constant -1 : i32
    %133 = vector.broadcast %c-1_i32_57 : i32 to vector<1x256xi32>
    %134 = arith.addi %30, %133 : vector<1x256xi32>
    %c0_i32_58 = arith.constant 0 : i32
    %135 = vector.broadcast %c0_i32_58 : i32 to vector<1x256xi32>
    %136 = arith.cmpi sge, %134, %135 : vector<1x256xi32>
    %c-1_i32_59 = arith.constant -1 : i32
    %137 = vector.broadcast %c-1_i32_59 : i32 to vector<1x256xi32>
    %138 = arith.addi %30, %137 : vector<1x256xi32>
    %c256_i32_60 = arith.constant 256 : i32
    %139 = vector.broadcast %c256_i32_60 : i32 to vector<1x256xi32>
    %140 = arith.cmpi slt, %138, %139 : vector<1x256xi32>
    %141 = arith.andi %136, %140 : vector<1x256xi1>
    %c-1_i32_61 = arith.constant -1 : i32
    %142 = vector.broadcast %c-1_i32_61 : i32 to vector<1x256xi32>
    %143 = arith.addi %46, %142 : vector<1x256xi32>
    %c0_i32_62 = arith.constant 0 : i32
    %144 = vector.broadcast %c0_i32_62 : i32 to vector<1x256xi32>
    %145 = arith.cmpi sge, %143, %144 : vector<1x256xi32>
    %146 = arith.andi %141, %145 : vector<1x256xi1>
    %c-1_i32_63 = arith.constant -1 : i32
    %147 = vector.broadcast %c-1_i32_63 : i32 to vector<1x256xi32>
    %148 = arith.addi %46, %147 : vector<1x256xi32>
    %c16_i32_64 = arith.constant 16 : i32
    %149 = vector.broadcast %c16_i32_64 : i32 to vector<1x256xi32>
    %150 = arith.cmpi slt, %148, %149 : vector<1x256xi32>
    %151 = arith.andi %146, %150 : vector<1x256xi1>
    %cst_65 = arith.constant 0.000000e+00 : f32
    %152 = vector.shape_cast %151 : vector<1x256xi1> to vector<1x256xi1>
    %153 = vector.broadcast %152 : vector<1x256xi1> to vector<4x256xi1>
    %154 = vector.broadcast %cst_65 : f32 to vector<4x256xf32>
    %155 = arith.select %153, %132, %154 : vector<4x256xi1>, vector<4x256xf32>
    %c3 = arith.constant 3 : index
    %c0_66 = arith.constant 0 : index
    %c0_67 = arith.constant 0 : index
    %156 = vector.load %arg6[%c3, %c0_66, %c0_67] : memref<9x4x4xf32, #tpu.memory_space<vmem>>, vector<1x4x4xf32>
    %157 = vector.shape_cast %156 : vector<1x4x4xf32> to vector<4x4xf32>
    %cst_68 = arith.constant dense<0.000000e+00> : vector<4x256xf32>
    %158 = tpu.matmul %157, %155, %cst_68 {dimension_numbers = #tpu.dot_dimension_numbers<[1], [0], [0], [1], [0, 0, 1, 1], [], []>} : vector<4x4xf32>, vector<4x256xf32>, vector<4x256xf32> -> vector<4x256xf32>
    %159 = arith.addf %131, %158 : vector<4x256xf32>
    %c0_i32_69 = arith.constant 0 : i32
    %160 = vector.broadcast %c0_i32_69 : i32 to vector<1x256xi32>
    %161 = arith.addi %30, %160 : vector<1x256xi32>
    %c0_i32_70 = arith.constant 0 : i32
    %162 = vector.broadcast %c0_i32_70 : i32 to vector<1x256xi32>
    %163 = arith.cmpi sge, %161, %162 : vector<1x256xi32>
    %c0_i32_71 = arith.constant 0 : i32
    %164 = vector.broadcast %c0_i32_71 : i32 to vector<1x256xi32>
    %165 = arith.addi %30, %164 : vector<1x256xi32>
    %c256_i32_72 = arith.constant 256 : i32
    %166 = vector.broadcast %c256_i32_72 : i32 to vector<1x256xi32>
    %167 = arith.cmpi slt, %165, %166 : vector<1x256xi32>
    %168 = arith.andi %163, %167 : vector<1x256xi1>
    %c0_i32_73 = arith.constant 0 : i32
    %169 = vector.broadcast %c0_i32_73 : i32 to vector<1x256xi32>
    %170 = arith.addi %46, %169 : vector<1x256xi32>
    %c0_i32_74 = arith.constant 0 : i32
    %171 = vector.broadcast %c0_i32_74 : i32 to vector<1x256xi32>
    %172 = arith.cmpi sge, %170, %171 : vector<1x256xi32>
    %173 = arith.andi %168, %172 : vector<1x256xi1>
    %c0_i32_75 = arith.constant 0 : i32
    %174 = vector.broadcast %c0_i32_75 : i32 to vector<1x256xi32>
    %175 = arith.addi %46, %174 : vector<1x256xi32>
    %c16_i32_76 = arith.constant 16 : i32
    %176 = vector.broadcast %c16_i32_76 : i32 to vector<1x256xi32>
    %177 = arith.cmpi slt, %175, %176 : vector<1x256xi32>
    %178 = arith.andi %173, %177 : vector<1x256xi1>
    %cst_77 = arith.constant 0.000000e+00 : f32
    %179 = vector.shape_cast %178 : vector<1x256xi1> to vector<1x256xi1>
    %180 = vector.broadcast %179 : vector<1x256xi1> to vector<4x256xi1>
    %181 = vector.broadcast %cst_77 : f32 to vector<4x256xf32>
    %182 = arith.select %180, %29, %181 : vector<4x256xi1>, vector<4x256xf32>
    %c4 = arith.constant 4 : index
    %c0_78 = arith.constant 0 : index
    %c0_79 = arith.constant 0 : index
    %183 = vector.load %arg6[%c4, %c0_78, %c0_79] : memref<9x4x4xf32, #tpu.memory_space<vmem>>, vector<1x4x4xf32>
    %184 = vector.shape_cast %183 : vector<1x4x4xf32> to vector<4x4xf32>
    %cst_80 = arith.constant dense<0.000000e+00> : vector<4x256xf32>
    %185 = tpu.matmul %184, %182, %cst_80 {dimension_numbers = #tpu.dot_dimension_numbers<[1], [0], [0], [1], [0, 0, 1, 1], [], []>} : vector<4x4xf32>, vector<4x256xf32>, vector<4x256xf32> -> vector<4x256xf32>
    %186 = arith.addf %159, %185 : vector<4x256xf32>
    %c255_i32 = arith.constant 255 : i32
    %187 = tpu.dynamic_rotate %29 by %c255_i32 dim 1 : vector<4x256xf32>, i32 -> vector<4x256xf32>
    %c1_i32_81 = arith.constant 1 : i32
    %188 = vector.broadcast %c1_i32_81 : i32 to vector<1x256xi32>
    %189 = arith.addi %30, %188 : vector<1x256xi32>
    %c0_i32_82 = arith.constant 0 : i32
    %190 = vector.broadcast %c0_i32_82 : i32 to vector<1x256xi32>
    %191 = arith.cmpi sge, %189, %190 : vector<1x256xi32>
    %c1_i32_83 = arith.constant 1 : i32
    %192 = vector.broadcast %c1_i32_83 : i32 to vector<1x256xi32>
    %193 = arith.addi %30, %192 : vector<1x256xi32>
    %c256_i32_84 = arith.constant 256 : i32
    %194 = vector.broadcast %c256_i32_84 : i32 to vector<1x256xi32>
    %195 = arith.cmpi slt, %193, %194 : vector<1x256xi32>
    %196 = arith.andi %191, %195 : vector<1x256xi1>
    %c1_i32_85 = arith.constant 1 : i32
    %197 = vector.broadcast %c1_i32_85 : i32 to vector<1x256xi32>
    %198 = arith.addi %46, %197 : vector<1x256xi32>
    %c0_i32_86 = arith.constant 0 : i32
    %199 = vector.broadcast %c0_i32_86 : i32 to vector<1x256xi32>
    %200 = arith.cmpi sge, %198, %199 : vector<1x256xi32>
    %201 = arith.andi %196, %200 : vector<1x256xi1>
    %c1_i32_87 = arith.constant 1 : i32
    %202 = vector.broadcast %c1_i32_87 : i32 to vector<1x256xi32>
    %203 = arith.addi %46, %202 : vector<1x256xi32>
    %c16_i32_88 = arith.constant 16 : i32
    %204 = vector.broadcast %c16_i32_88 : i32 to vector<1x256xi32>
    %205 = arith.cmpi slt, %203, %204 : vector<1x256xi32>
    %206 = arith.andi %201, %205 : vector<1x256xi1>
    %cst_89 = arith.constant 0.000000e+00 : f32
    %207 = vector.shape_cast %206 : vector<1x256xi1> to vector<1x256xi1>
    %208 = vector.broadcast %207 : vector<1x256xi1> to vector<4x256xi1>
    %209 = vector.broadcast %cst_89 : f32 to vector<4x256xf32>
    %210 = arith.select %208, %187, %209 : vector<4x256xi1>, vector<4x256xf32>
    %c5 = arith.constant 5 : index
    %c0_90 = arith.constant 0 : index
    %c0_91 = arith.constant 0 : index
    %211 = vector.load %arg6[%c5, %c0_90, %c0_91] : memref<9x4x4xf32, #tpu.memory_space<vmem>>, vector<1x4x4xf32>
    %212 = vector.shape_cast %211 : vector<1x4x4xf32> to vector<4x4xf32>
    %cst_92 = arith.constant dense<0.000000e+00> : vector<4x256xf32>
    %213 = tpu.matmul %212, %210, %cst_92 {dimension_numbers = #tpu.dot_dimension_numbers<[1], [0], [0], [1], [0, 0, 1, 1], [], []>} : vector<4x4xf32>, vector<4x256xf32>, vector<4x256xf32> -> vector<4x256xf32>
    %214 = arith.addf %186, %213 : vector<4x256xf32>
    %c241_i32 = arith.constant 241 : i32
    %215 = tpu.dynamic_rotate %29 by %c241_i32 dim 1 : vector<4x256xf32>, i32 -> vector<4x256xf32>
    %c15_i32_93 = arith.constant 15 : i32
    %216 = vector.broadcast %c15_i32_93 : i32 to vector<1x256xi32>
    %217 = arith.addi %30, %216 : vector<1x256xi32>
    %c0_i32_94 = arith.constant 0 : i32
    %218 = vector.broadcast %c0_i32_94 : i32 to vector<1x256xi32>
    %219 = arith.cmpi sge, %217, %218 : vector<1x256xi32>
    %c15_i32_95 = arith.constant 15 : i32
    %220 = vector.broadcast %c15_i32_95 : i32 to vector<1x256xi32>
    %221 = arith.addi %30, %220 : vector<1x256xi32>
    %c256_i32_96 = arith.constant 256 : i32
    %222 = vector.broadcast %c256_i32_96 : i32 to vector<1x256xi32>
    %223 = arith.cmpi slt, %221, %222 : vector<1x256xi32>
    %224 = arith.andi %219, %223 : vector<1x256xi1>
    %c-1_i32_97 = arith.constant -1 : i32
    %225 = vector.broadcast %c-1_i32_97 : i32 to vector<1x256xi32>
    %226 = arith.addi %46, %225 : vector<1x256xi32>
    %c0_i32_98 = arith.constant 0 : i32
    %227 = vector.broadcast %c0_i32_98 : i32 to vector<1x256xi32>
    %228 = arith.cmpi sge, %226, %227 : vector<1x256xi32>
    %229 = arith.andi %224, %228 : vector<1x256xi1>
    %c-1_i32_99 = arith.constant -1 : i32
    %230 = vector.broadcast %c-1_i32_99 : i32 to vector<1x256xi32>
    %231 = arith.addi %46, %230 : vector<1x256xi32>
    %c16_i32_100 = arith.constant 16 : i32
    %232 = vector.broadcast %c16_i32_100 : i32 to vector<1x256xi32>
    %233 = arith.cmpi slt, %231, %232 : vector<1x256xi32>
    %234 = arith.andi %229, %233 : vector<1x256xi1>
    %cst_101 = arith.constant 0.000000e+00 : f32
    %235 = vector.shape_cast %234 : vector<1x256xi1> to vector<1x256xi1>
    %236 = vector.broadcast %235 : vector<1x256xi1> to vector<4x256xi1>
    %237 = vector.broadcast %cst_101 : f32 to vector<4x256xf32>
    %238 = arith.select %236, %215, %237 : vector<4x256xi1>, vector<4x256xf32>
    %c6 = arith.constant 6 : index
    %c0_102 = arith.constant 0 : index
    %c0_103 = arith.constant 0 : index
    %239 = vector.load %arg6[%c6, %c0_102, %c0_103] : memref<9x4x4xf32, #tpu.memory_space<vmem>>, vector<1x4x4xf32>
    %240 = vector.shape_cast %239 : vector<1x4x4xf32> to vector<4x4xf32>
    %cst_104 = arith.constant dense<0.000000e+00> : vector<4x256xf32>
    %241 = tpu.matmul %240, %238, %cst_104 {dimension_numbers = #tpu.dot_dimension_numbers<[1], [0], [0], [1], [0, 0, 1, 1], [], []>} : vector<4x4xf32>, vector<4x256xf32>, vector<4x256xf32> -> vector<4x256xf32>
    %242 = arith.addf %214, %241 : vector<4x256xf32>
    %c240_i32 = arith.constant 240 : i32
    %243 = tpu.dynamic_rotate %29 by %c240_i32 dim 1 : vector<4x256xf32>, i32 -> vector<4x256xf32>
    %c16_i32_105 = arith.constant 16 : i32
    %244 = vector.broadcast %c16_i32_105 : i32 to vector<1x256xi32>
    %245 = arith.addi %30, %244 : vector<1x256xi32>
    %c0_i32_106 = arith.constant 0 : i32
    %246 = vector.broadcast %c0_i32_106 : i32 to vector<1x256xi32>
    %247 = arith.cmpi sge, %245, %246 : vector<1x256xi32>
    %c16_i32_107 = arith.constant 16 : i32
    %248 = vector.broadcast %c16_i32_107 : i32 to vector<1x256xi32>
    %249 = arith.addi %30, %248 : vector<1x256xi32>
    %c256_i32_108 = arith.constant 256 : i32
    %250 = vector.broadcast %c256_i32_108 : i32 to vector<1x256xi32>
    %251 = arith.cmpi slt, %249, %250 : vector<1x256xi32>
    %252 = arith.andi %247, %251 : vector<1x256xi1>
    %c0_i32_109 = arith.constant 0 : i32
    %253 = vector.broadcast %c0_i32_109 : i32 to vector<1x256xi32>
    %254 = arith.addi %46, %253 : vector<1x256xi32>
    %c0_i32_110 = arith.constant 0 : i32
    %255 = vector.broadcast %c0_i32_110 : i32 to vector<1x256xi32>
    %256 = arith.cmpi sge, %254, %255 : vector<1x256xi32>
    %257 = arith.andi %252, %256 : vector<1x256xi1>
    %c0_i32_111 = arith.constant 0 : i32
    %258 = vector.broadcast %c0_i32_111 : i32 to vector<1x256xi32>
    %259 = arith.addi %46, %258 : vector<1x256xi32>
    %c16_i32_112 = arith.constant 16 : i32
    %260 = vector.broadcast %c16_i32_112 : i32 to vector<1x256xi32>
    %261 = arith.cmpi slt, %259, %260 : vector<1x256xi32>
    %262 = arith.andi %257, %261 : vector<1x256xi1>
    %cst_113 = arith.constant 0.000000e+00 : f32
    %263 = vector.shape_cast %262 : vector<1x256xi1> to vector<1x256xi1>
    %264 = vector.broadcast %263 : vector<1x256xi1> to vector<4x256xi1>
    %265 = vector.broadcast %cst_113 : f32 to vector<4x256xf32>
    %266 = arith.select %264, %243, %265 : vector<4x256xi1>, vector<4x256xf32>
    %c7 = arith.constant 7 : index
    %c0_114 = arith.constant 0 : index
    %c0_115 = arith.constant 0 : index
    %267 = vector.load %arg6[%c7, %c0_114, %c0_115] : memref<9x4x4xf32, #tpu.memory_space<vmem>>, vector<1x4x4xf32>
    %268 = vector.shape_cast %267 : vector<1x4x4xf32> to vector<4x4xf32>
    %cst_116 = arith.constant dense<0.000000e+00> : vector<4x256xf32>
    %269 = tpu.matmul %268, %266, %cst_116 {dimension_numbers = #tpu.dot_dimension_numbers<[1], [0], [0], [1], [0, 0, 1, 1], [], []>} : vector<4x4xf32>, vector<4x256xf32>, vector<4x256xf32> -> vector<4x256xf32>
    %270 = arith.addf %242, %269 : vector<4x256xf32>
    %c239_i32 = arith.constant 239 : i32
    %271 = tpu.dynamic_rotate %29 by %c239_i32 dim 1 : vector<4x256xf32>, i32 -> vector<4x256xf32>
    %c17_i32_117 = arith.constant 17 : i32
    %272 = vector.broadcast %c17_i32_117 : i32 to vector<1x256xi32>
    %273 = arith.addi %30, %272 : vector<1x256xi32>
    %c0_i32_118 = arith.constant 0 : i32
    %274 = vector.broadcast %c0_i32_118 : i32 to vector<1x256xi32>
    %275 = arith.cmpi sge, %273, %274 : vector<1x256xi32>
    %c17_i32_119 = arith.constant 17 : i32
    %276 = vector.broadcast %c17_i32_119 : i32 to vector<1x256xi32>
    %277 = arith.addi %30, %276 : vector<1x256xi32>
    %c256_i32_120 = arith.constant 256 : i32
    %278 = vector.broadcast %c256_i32_120 : i32 to vector<1x256xi32>
    %279 = arith.cmpi slt, %277, %278 : vector<1x256xi32>
    %280 = arith.andi %275, %279 : vector<1x256xi1>
    %c1_i32_121 = arith.constant 1 : i32
    %281 = vector.broadcast %c1_i32_121 : i32 to vector<1x256xi32>
    %282 = arith.addi %46, %281 : vector<1x256xi32>
    %c0_i32_122 = arith.constant 0 : i32
    %283 = vector.broadcast %c0_i32_122 : i32 to vector<1x256xi32>
    %284 = arith.cmpi sge, %282, %283 : vector<1x256xi32>
    %285 = arith.andi %280, %284 : vector<1x256xi1>
    %c1_i32_123 = arith.constant 1 : i32
    %286 = vector.broadcast %c1_i32_123 : i32 to vector<1x256xi32>
    %287 = arith.addi %46, %286 : vector<1x256xi32>
    %c16_i32_124 = arith.constant 16 : i32
    %288 = vector.broadcast %c16_i32_124 : i32 to vector<1x256xi32>
    %289 = arith.cmpi slt, %287, %288 : vector<1x256xi32>
    %290 = arith.andi %285, %289 : vector<1x256xi1>
    %cst_125 = arith.constant 0.000000e+00 : f32
    %291 = vector.shape_cast %290 : vector<1x256xi1> to vector<1x256xi1>
    %292 = vector.broadcast %291 : vector<1x256xi1> to vector<4x256xi1>
    %293 = vector.broadcast %cst_125 : f32 to vector<4x256xf32>
    %294 = arith.select %292, %271, %293 : vector<4x256xi1>, vector<4x256xf32>
    %c8 = arith.constant 8 : index
    %c0_126 = arith.constant 0 : index
    %c0_127 = arith.constant 0 : index
    %295 = vector.load %arg6[%c8, %c0_126, %c0_127] : memref<9x4x4xf32, #tpu.memory_space<vmem>>, vector<1x4x4xf32>
    %296 = vector.shape_cast %295 : vector<1x4x4xf32> to vector<4x4xf32>
    %cst_128 = arith.constant dense<0.000000e+00> : vector<4x256xf32>
    %297 = tpu.matmul %296, %294, %cst_128 {dimension_numbers = #tpu.dot_dimension_numbers<[1], [0], [0], [1], [0, 0, 1, 1], [], []>} : vector<4x4xf32>, vector<4x256xf32>, vector<4x256xf32> -> vector<4x256xf32>
    %298 = arith.addf %270, %297 : vector<4x256xf32>
    %c0_129 = arith.constant 0 : index
    %c0_130 = arith.constant 0 : index
    %299 = vector.load %arg7[%c0_129, %c0_130] : memref<4x1xf32, #tpu.memory_space<vmem>>, vector<4x1xf32>
    %300 = vector.broadcast %299 : vector<4x1xf32> to vector<4x256xf32>
    %301 = arith.addf %298, %300 : vector<4x256xf32>
    %cst_131 = arith.constant 3.000000e+00 : f32
    %302 = vector.broadcast %cst_131 : f32 to vector<4x256xf32>
    %303 = arith.addf %301, %302 : vector<4x256xf32>
    %cst_132 = arith.constant 0.000000e+00 : f32
    %cst_133 = arith.constant 6.000000e+00 : f32
    %304 = vector.broadcast %cst_132 : f32 to vector<4x256xf32>
    %305 = arith.maximumf %304, %303 : vector<4x256xf32>
    %306 = vector.broadcast %cst_133 : f32 to vector<4x256xf32>
    %307 = arith.minimumf %306, %305 : vector<4x256xf32>
    %308 = arith.mulf %301, %307 : vector<4x256xf32>
    %cst_134 = arith.constant 0.166666672 : f32
    %309 = vector.broadcast %cst_134 : f32 to vector<4x256xf32>
    %310 = arith.mulf %308, %309 : vector<4x256xf32>
    %311 = arith.addf %15, %310 : vector<4x256xf32>
    %c0_135 = arith.constant 0 : index
    %c0_136 = arith.constant 0 : index
    %312 = vector.load %arg8[%c0_135, %c0_136] : memref<4x4xf32, #tpu.memory_space<vmem>>, vector<4x4xf32>
    %cst_137 = arith.constant dense<0.000000e+00> : vector<4x256xf32>
    %313 = tpu.matmul %312, %311, %cst_137 {dimension_numbers = #tpu.dot_dimension_numbers<[1], [0], [0], [1], [0, 0, 1, 1], [], []>} : vector<4x4xf32>, vector<4x256xf32>, vector<4x256xf32> -> vector<4x256xf32>
    %c0_138 = arith.constant 0 : index
    %c0_139 = arith.constant 0 : index
    %314 = vector.load %arg9[%c0_138, %c0_139] : memref<4x1xf32, #tpu.memory_space<vmem>>, vector<4x1xf32>
    %315 = vector.broadcast %314 : vector<4x1xf32> to vector<4x256xf32>
    %316 = arith.addf %313, %315 : vector<4x256xf32>
    %c0_140 = arith.constant 0 : index
    %c0_141 = arith.constant 0 : index
    %317 = vector.load %arg10[%c0_140, %c0_141] : memref<4x4xf32, #tpu.memory_space<vmem>>, vector<4x4xf32>
    %cst_142 = arith.constant dense<0.000000e+00> : vector<4x256xf32>
    %318 = tpu.matmul %317, %1, %cst_142 {dimension_numbers = #tpu.dot_dimension_numbers<[1], [0], [0], [1], [0, 0, 1, 1], [], []>} : vector<4x4xf32>, vector<4x256xf32>, vector<4x256xf32> -> vector<4x256xf32>
    %c0_143 = arith.constant 0 : index
    %c0_144 = arith.constant 0 : index
    %319 = vector.load %arg11[%c0_143, %c0_144] : memref<4x1xf32, #tpu.memory_space<vmem>>, vector<4x1xf32>
    %320 = vector.broadcast %319 : vector<4x1xf32> to vector<4x256xf32>
    %321 = arith.addf %318, %320 : vector<4x256xf32>
    %cst_145 = arith.constant 1.000000e-01 : f32
    %322 = vector.broadcast %cst_145 : f32 to vector<4x256xf32>
    %323 = arith.mulf %322, %316 : vector<4x256xf32>
    %324 = arith.maximumf %316, %323 : vector<4x256xf32>
    %cst_146 = arith.constant 1.000000e-01 : f32
    %325 = vector.broadcast %cst_146 : f32 to vector<4x256xf32>
    %326 = arith.mulf %325, %321 : vector<4x256xf32>
    %327 = arith.maximumf %321, %326 : vector<4x256xf32>
    %c0_147 = arith.constant 0 : index
    %c0_148 = arith.constant 0 : index
    %328 = vector.load %arg12[%c0_147, %c0_148] : memref<8x8xf32, #tpu.memory_space<vmem>>, vector<8x8xf32>
    %329 = vector.extract_strided_slice %328 {offsets = [0, 0], sizes = [8, 4], strides = [1, 1]} : vector<8x8xf32> to vector<8x4xf32>
    %cst_149 = arith.constant dense<0.000000e+00> : vector<8x256xf32>
    %330 = tpu.matmul %329, %324, %cst_149 {dimension_numbers = #tpu.dot_dimension_numbers<[1], [0], [0], [1], [0, 0, 1, 1], [], []>} : vector<8x4xf32>, vector<4x256xf32>, vector<8x256xf32> -> vector<8x256xf32>
    %331 = vector.extract_strided_slice %328 {offsets = [0, 4], sizes = [8, 4], strides = [1, 1]} : vector<8x8xf32> to vector<8x4xf32>
    %cst_150 = arith.constant dense<0.000000e+00> : vector<8x256xf32>
    %332 = tpu.matmul %331, %327, %cst_150 {dimension_numbers = #tpu.dot_dimension_numbers<[1], [0], [0], [1], [0, 0, 1, 1], [], []>} : vector<8x4xf32>, vector<4x256xf32>, vector<8x256xf32> -> vector<8x256xf32>
    %333 = arith.addf %330, %332 : vector<8x256xf32>
    %c0_151 = arith.constant 0 : index
    %c0_152 = arith.constant 0 : index
    %334 = vector.load %arg13[%c0_151, %c0_152] : memref<8x1xf32, #tpu.memory_space<vmem>>, vector<8x1xf32>
    %335 = vector.broadcast %334 : vector<8x1xf32> to vector<8x256xf32>
    %336 = arith.addf %333, %335 : vector<8x256xf32>
    %cst_153 = arith.constant 3.000000e+00 : f32
    %337 = vector.broadcast %cst_153 : f32 to vector<8x256xf32>
    %338 = arith.addf %336, %337 : vector<8x256xf32>
    %cst_154 = arith.constant 0.000000e+00 : f32
    %cst_155 = arith.constant 6.000000e+00 : f32
    %339 = vector.broadcast %cst_154 : f32 to vector<8x256xf32>
    %340 = arith.maximumf %339, %338 : vector<8x256xf32>
    %341 = vector.broadcast %cst_155 : f32 to vector<8x256xf32>
    %342 = arith.minimumf %341, %340 : vector<8x256xf32>
    %343 = arith.mulf %336, %342 : vector<8x256xf32>
    %cst_156 = arith.constant 0.166666672 : f32
    %344 = vector.broadcast %cst_156 : f32 to vector<8x256xf32>
    %345 = arith.mulf %343, %344 : vector<8x256xf32>
    %c0_157 = arith.constant 0 : index
    %c0_158 = arith.constant 0 : index
    %c0_159 = arith.constant 0 : index
    %346 = vector.load %arg14[%c0_157, %c0_158, %c0_159] : memref<1x8x256xf32, #tpu.memory_space<vmem>>, vector<1x8x256xf32>
    %347 = vector.shape_cast %346 : vector<1x8x256xf32> to vector<8x256xf32>
    %348 = vector.shape_cast %345 : vector<8x256xf32> to vector<1x8x256xf32>
    tpu.vector_store %arg14[%c0_157, %c0_158, %c0_159], %348 {strides = array<i32>} : memref<1x8x256xf32, #tpu.memory_space<vmem>>, vector<1x8x256xf32>,
    return
  }
  func.func @transform_0(%arg0: i32) -> (i32, i32, i32) {
    %c0_i32 = arith.constant 0 : i32
    %c0_i32_0 = arith.constant 0 : i32
    %c0_i32_1 = arith.constant 0 : i32
    return %arg0, %c0_i32, %c0_i32_0 : i32, i32, i32
  }
  func.func @transform_1(%arg0: i32) -> (i32, i32) {
    %c0_i32 = arith.constant 0 : i32
    %c0_i32_0 = arith.constant 0 : i32
    %c0_i32_1 = arith.constant 0 : i32
    return %c0_i32, %c0_i32_0 : i32, i32
  }
  func.func @transform_2(%arg0: i32) -> (i32, i32) {
    %c0_i32 = arith.constant 0 : i32
    %c0_i32_0 = arith.constant 0 : i32
    %c0_i32_1 = arith.constant 0 : i32
    return %c0_i32, %c0_i32_0 : i32, i32
  }
  func.func @transform_3(%arg0: i32) -> (i32, i32) {
    %c0_i32 = arith.constant 0 : i32
    %c0_i32_0 = arith.constant 0 : i32
    %c0_i32_1 = arith.constant 0 : i32
    return %c0_i32, %c0_i32_0 : i32, i32
  }
  func.func @transform_4(%arg0: i32) -> (i32, i32) {
    %c0_i32 = arith.constant 0 : i32
    %c0_i32_0 = arith.constant 0 : i32
    %c0_i32_1 = arith.constant 0 : i32
    return %c0_i32, %c0_i32_0 : i32, i32
  }
  func.func @transform_5(%arg0: i32) -> (i32, i32, i32) {
    %c0_i32 = arith.constant 0 : i32
    %c0_i32_0 = arith.constant 0 : i32
    %c0_i32_1 = arith.constant 0 : i32
    %c0_i32_2 = arith.constant 0 : i32
    return %c0_i32, %c0_i32_0, %c0_i32_1 : i32, i32, i32
  }
  func.func @transform_6(%arg0: i32) -> (i32, i32) {
    %c0_i32 = arith.constant 0 : i32
    %c0_i32_0 = arith.constant 0 : i32
    %c0_i32_1 = arith.constant 0 : i32
    return %c0_i32, %c0_i32_0 : i32, i32
  }
  func.func @transform_7(%arg0: i32) -> (i32, i32) {
    %c0_i32 = arith.constant 0 : i32
    %c0_i32_0 = arith.constant 0 : i32
    %c0_i32_1 = arith.constant 0 : i32
    return %c0_i32, %c0_i32_0 : i32, i32
  }
  func.func @transform_8(%arg0: i32) -> (i32, i32) {
    %c0_i32 = arith.constant 0 : i32
    %c0_i32_0 = arith.constant 0 : i32
    %c0_i32_1 = arith.constant 0 : i32
    return %c0_i32, %c0_i32_0 : i32, i32
  }
  func.func @transform_9(%arg0: i32) -> (i32, i32) {
    %c0_i32 = arith.constant 0 : i32
    %c0_i32_0 = arith.constant 0 : i32
    %c0_i32_1 = arith.constant 0 : i32
    return %c0_i32, %c0_i32_0 : i32, i32
  }
  func.func @transform_10(%arg0: i32) -> (i32, i32) {
    %c0_i32 = arith.constant 0 : i32
    %c0_i32_0 = arith.constant 0 : i32
    %c0_i32_1 = arith.constant 0 : i32
    return %c0_i32, %c0_i32_0 : i32, i32
  }
  func.func @transform_11(%arg0: i32) -> (i32, i32) {
    %c0_i32 = arith.constant 0 : i32
    %c0_i32_0 = arith.constant 0 : i32
    %c0_i32_1 = arith.constant 0 : i32
    return %c0_i32, %c0_i32_0 : i32, i32
  }
  func.func @transform_12(%arg0: i32) -> (i32, i32) {
    %c0_i32 = arith.constant 0 : i32
    %c0_i32_0 = arith.constant 0 : i32
    %c0_i32_1 = arith.constant 0 : i32
    return %c0_i32, %c0_i32_0 : i32, i32
  }
  func.func @transform_13(%arg0: i32) -> (i32, i32, i32) {
    %c0_i32 = arith.constant 0 : i32
    %c0_i32_0 = arith.constant 0 : i32
    %c0_i32_1 = arith.constant 0 : i32
    return %arg0, %c0_i32, %c0_i32_0 : i32, i32, i32
  }
}

</mosaic_0001>

<bundles_post_ra>
// kernel: tpu_custom_call.1
= control target key start
LH: loop header
LB: loop body
LE: loop exit
PB: predicated region body
PF: predicated region fallthrough
CT: control target
= control target key end

     0   :  { %s2231_s0 = inlined_call_operand.vmem [shape: f32[2,4,256], index: 0, kind: input, shape index: {}]   ;;  %s2232_s1 = inlined_call_operand.vmem [shape: f32[4,4], index: 1, kind: input, shape index: {}]   ;;  %s2233_s2 = inlined_call_operand.vmem [shape: f32[4,1], index: 2, kind: input, shape index: {}]   ;;  %s2234_s3 = inlined_call_operand.vmem [shape: f32[4,4], index: 3, kind: input, shape index: {}]   ;;  %s2235_s4 = inlined_call_operand.vmem [shape: f32[4,1], index: 4, kind: input, shape index: {}]   ;;  %s2236_s5 = inlined_call_operand.vmem [shape: f32[9,4,4], index: 5, kind: input, shape index: {}]   ;;  %s2237_s6 = inlined_call_operand.vmem [shape: f32[4,1], index: 6, kind: input, shape index: {}]   ;;  %s2238_s7 = inlined_call_operand.vmem [shape: f32[4,4], index: 7, kind: input, shape index: {}]   ;;  %s2239_s8 = inlined_call_operand.vmem [shape: f32[4,1], index: 8, kind: input, shape index: {}]   ;;  %s2240_s9 = inlined_call_operand.vmem [shape: f32[4,4], index: 9, kind: input, shape index: {}]   ;;  %s2241_s10 = inlined_call_operand.vmem [shape: f32[4,1], index: 10, kind: input, shape index: {}]   ;;  %s2242_s11 = inlined_call_operand.vmem [shape: f32[8,8], index: 11, kind: input, shape index: {}]   ;;  %s2243_s12 = inlined_call_operand.vmem [shape: f32[8,1], index: 12, kind: input, shape index: {}]   ;;  %s2244_s13 = inlined_call_operand.hbm [shape: f32[2,8,256], index: 13, kind: output, shape index: {}]  }
   0x1   :  { %2246 = sst [smem:[#allocation7_spill]] %s2231_s0 }
   0x2   :  { %18 = vsyncpa [#allocation3], 0 }
   0x3   :  { %20 = vsyncpa [#allocation3 + $0x1], 0  ;;  %s1922_s25 = smov 0   ;;  %s1924_s26 = smov 0  }
   0x4   :  { %s1926_s27 = smov 0   ;;  %s1928_s28 = smov 0  }
   0x5 LB: > { %2247 = sst [smem:[#allocation5_spill]] %s1836_s27  ;;  %s1943_s29 = sadd.s32 4294967295, %s1840_s28   ;;  %s1840_s28 = sphi %s1928_s28, %s2258_s28   ;;  %s1836_s27 = sphi %s1926_s27, %s2255_s27   ;;  %s1832_s26 = sphi %s1924_s26, %s2257_s26   ;;  %s1828_s25 = sphi %s1922_s25, %s2256_s25  }
   0x6   : > { %s1644_s30 = sadd.s32 4294967294, %s1840_s28   ;;  %s1947_s14 = sadd.s32 1, %s1840_s28  }
   0x7   : > { %s311_s15 = sadd.s32 1, %s1836_s27  ;;  %s308_s16 = ssub.s32 %s1840_s28, %s1947_s14 }
   0x8   : > { %p321_p0 = scmp.ne.s32.totalorder %s1836_s27, %s1832_s26  ;;  %p309_p1 = scmp.eq.s32.totalorder %s308_s16, 0 }
   0x9   : > { %p322_p2 = scmp.eq.s32.totalorder %s1943_s29, 1  ;;  %p327_p3 = scmp.ne.s32.totalorder %s1832_s26, %s1828_s25 }
   0xa   : > { %p328_p4 = scmp.eq.s32.totalorder %s1644_s30, 1  ;;  %p1647_p7 = scmp.ge.s32.totalorder %s1840_s28, 1 }
   0xb   : > { %s1958_s17 = scalar_select %p309_p1, %s1836_s27, %s311_s15  }
   0xc   : > { %p1960_p5 = por %p322_p2, %p321_p0  ;;  %p1964_p6 = por %p328_p4, %p327_p3 }
   0xd   : > { %2248 = sst [smem:[#allocation6_spill]] %s1958_s17  ;;  %p390_p8 = scmp.lt.s32.totalorder %s1840_s28, 3 }
   0xf   : > { %p391_p9 = pnand %p1647_p7, %p390_p8 }
  0x10   : > { %p434_p10 = scmp.lt.s32.totalorder (!%p391_p9), %s1943_s29, 1  ;;  %s2251_s0 = sld [smem:[#allocation7_spill]] (!%p391_p9) }
  0x11   : > { %394 = sbr.rel (%p391_p9) target bundleno = 905 (0x389), region = 72  ;;  %s1843_s21 = smov (!%p391_p9), 15  }
  0x12   : > { %s1846_s24 = smov (!%p391_p9), 1   ;;  %s1847_s30 = smov (!%p391_p9), 113  }
  0x13   : > { %s1849_s16 = smov (!%p391_p9), 127   ;;  %s1850_s17 = smov (!%p391_p9), 111  }
  0x16   : > { %v1842_v0 = vmov 0   ;;  %v441_v1 = vld [vmem:[%s2233_s2] sm:$0xf]  ;;  %s435_s22 = scalar_select %p434_p10, %s1943_s29, 1  ;;  %vm455_vm0 = vcmask 1043456   ;;  %vm451_vm1 = vcmask 31744   ;;  %v576_v39 = vlaneseq }
  0x17   : > { %1775 = vset.pattern.permute.xlu0 %v1842_v0  ;;  %1776 = vset.pattern.permute.xlu1 %v1842_v0  ;;  %v511_v3 = vld [vmem:[%s2235_s4] sm:$0xf]  ;;  %v1659_v44 = vld [vmem:[%s2236_s5 + $0x4] sm:$0xf] }
  0x18   : > { %444 = vperm.xlu0 %1775, %v441_v1   ;;  %1777 = vset.pattern.permute.xlu2 %v1842_v0  ;;  %s1724_s23 = sshll.u32 %s435_s22, 3  ;;  %v440_v4 = vld [vmem:[%s2232_s1] sm:$0xf]  ;;  %s1844_s22 = smov 16   ;;  %v2024_v40 = vand.u32 127, %v576_v39 }
  0x19   : > { %s438_s15 = scalar_lea.vmem %s2251_s0, %s1724_s23  ;;  %v510_v22 = vld [vmem:[%s2234_s3] sm:$0xf]  ;;  %s1845_s23 = smov 17   ;;  %v1688_v39 = vld [vmem:[%s2236_s5 + $0x18] sm:$0xf] }
  0x1a   : > { %v439_v2 = vld [vmem:[%s438_s15] sm:$0xff]  ;;  %s1848_s15 = smov 112   ;;  %v642_v42 = vadd.s32 4294967280, %v2024_v40  ;;  %vm639_vm2 = vcmp.lt.s32.totalorder %v2024_v40, 16  ;;  %v2036_v48 = vadd.s32 128, %v2024_v40  ;;  %v583_v49 = vand.u32 15, %v2024_v40 }
  0x1b   : > { %448 = vst [vmem:[#allocation1] ss:$2 sm:$0xff] %v439_v2  ;;  %v1307_v38 = vld [vmem:[%s2237_s6] sm:$0xf]  ;;  %v855_v53 = vadd.s32 4294967295, %v2024_v40  ;;  %v610_v55 = vadd.s32 4294967279, %v2024_v40 }
  0x1c   : > { %vm644_vm3 = vcmp.ge.s32.totalorder %v642_v42, 0  ;;  %v590_v51 = vand.u32 15, %v2036_v48  ;;  %v2040_v52 = vadd.s32 4294967295, %v583_v49  ;;  %vm852_vm7 = vcmp.lt.s32.totalorder %v2024_v40, 1 }
  0x1d   : > { %vm857_vm5 = vcmp.ge.s32.totalorder %v855_v53, 0  ;;  %vm612_vm6 = vcmp.ge.s32.totalorder %v610_v55, 0  ;;  %vm607_vm9 = vcmp.lt.s32.totalorder %v2024_v40, 17  ;;  %v771_v63 = vadd.s32 4294967281, %v2024_v40 }
  0x1e   : > { %v2044_v57 = vadd.s32 4294967295, %v590_v51  ;;  %vm620_vm4 = vcmp.ge.s32.totalorder %v2040_v52, 0  ;;  %v2059_v0 = vadd.s32 1, %v583_v49  ;;  %vm768_vm14 = vcmp.lt.s32.totalorder %v2024_v40, 15 }
  0x1f   : > { %vm2050_vm8 = vmand %vm857_vm5, %vm620_vm4  ;;  %vm773_vm12 = vcmp.ge.s32.totalorder %v771_v63, 0  ;;  %vm1155_vm5 = vcmp.lt.s32.totalorder %v2024_v40, 112 }
  0x20   : > { %514 = vperm.xlu0 %1775, %v511_v3   ;;  %vm621_vm10 = vcmp.ge.s32.totalorder %v2044_v57, 0  ;;  %vm622_vm11 = vmand %vm612_vm6, %vm620_vm4  ;;  %v634_v3 = vld [vmem:[%s2236_s5] sm:$0xf]  ;;  %vm785_vm13 = vcmp.lt.s32.totalorder %v2059_v0, 16  ;;  %vm999_vm6 = vcmp.lt.s32.totalorder %v2024_v40, 127 }
  0x21   : > { %v1383_v0 = vld [vmem:[%s2240_s9] sm:$0xf] }
  0x22   : > { %v449_v5 = vld.sshfl [vmem:[#allocation1] sm:$0xff pattern:$0x75316420]  ;;  %v450_v6 = vld.sshfl [vmem:[#allocation1 + $0x8] sm:$0xff pattern:$0x75316420] }
  0x23   : > { %1651 = vmatpush.msk.msra.mxu0 %vm455_vm0, %v449_v5  ;;  %1653 = vmatpush.msk.msra.mxu1 %vm455_vm0, %v450_v6  ;;  %1390 = vst [vmem:[#allocation1] ss:$2 sm:$0xff] %v439_v2 }
  0x24   : > { %1652 = vmatmul.msk.f32.vlgmr.msra.gmra.mxu0 %vm451_vm1, %v440_v4  ;;  %1654 = vmatmul.msk.f32.vlgmr.msra.gmra.mxu1 %vm451_vm1, %v440_v4 }
  0x2a   : > { %v1392_v63 = vld.sshfl [vmem:[#allocation1 + $0x8] sm:$0xff pattern:$0x75316420] }
  0x8a   : > { %v445_v7 = vpop.permute.xlu0 %444 }
  0x92   : > { %v515_v23 = vpop.permute.xlu0 %514 }
  0xa1   : > { %v477_v8 = vpop.f32.mrf.mxu0  ;;  %v497_v9 = vpop.f32.mrf.mxu1 }
  0xa2   : > { %v478_v10 = vadd.f32 %v477_v8, %v445_v7  ;;  %v498_v11 = vadd.f32 %v497_v9, %v445_v7  ;;  %v2072_v8 = vadd.s32 1, %v590_v51 }
  0xa4   : > { %v500_v12 = vadd.f32 3.0, %v478_v10  ;;  %v501_v13 = vadd.f32 3.0, %v498_v11  ;;  %vm786_vm15 = vcmp.lt.s32.totalorder %v2072_v8, 16 }
  0xa6   : > { %v502_v14 = vmax.f32 %v500_v12, 0.0  ;;  %v503_v15 = vmax.f32 %v501_v13, 0.0  ;;  %v1003_v12 = vadd.s32 1, %v2036_v48 }
  0xa8   : > { %v504_v16 = vmin.f32 %v502_v14, 6.0  ;;  %v505_v17 = vmin.f32 %v503_v15, 6.0  ;;  %v1668_v15 = vld [vmem:[%s2236_s5 + $0x8] sm:$0xf] }
  0xaa   : > { %v506_v18 = vmul.f32 %v504_v16, %v478_v10  ;;  %v507_v19 = vmul.f32 %v505_v17, %v498_v11 }
  0xac   : > { %v1988_v20 = vmul.f32 0.16666667, %v506_v18  ;;  %v1990_v21 = vmul.f32 0.16666667, %v507_v19  ;;  %v1673_v18 = vld [vmem:[%s2236_s5 + $0xc] sm:$0xf] }
  0xad   : > { %v1159_v19 = vadd.s32 16, %v2036_v48 }
  0xae   : > { %1655 = vmatpush.msk.msra.mxu2 %vm455_vm0, %v1988_v20  ;;  %1657 = vmatpush.msk.msra.mxu3 %vm455_vm0, %v1990_v21 }
  0xaf   : > { %1656 = vmatmul.msk.f32.vlgmr.msra.gmra.mxu2 %vm451_vm1, %v510_v22  ;;  %1658 = vmatmul.msk.f32.vlgmr.msra.gmra.mxu3 %vm451_vm1, %v510_v22 }
 0x132   : > { %v543_v24 = vpop.f32.mrf.mxu2  ;;  %v563_v25 = vpop.f32.mrf.mxu3 }
 0x133   : > { %v544_v26 = vadd.f32 %v543_v24, %v515_v23  ;;  %v564_v27 = vadd.f32 %v563_v25, %v515_v23 }
 0x135   : > { %v566_v28 = vadd.f32 3.0, %v544_v26  ;;  %v567_v29 = vadd.f32 3.0, %v564_v27 }
 0x137   : > { %v568_v30 = vmax.f32 %v566_v28, 0.0  ;;  %v569_v32 = vmax.f32 %v567_v29, 0.0  ;;  %v1678_v29 = vld [vmem:[%s2236_s5 + $0x10] sm:$0xf] }
 0x139   : > { %v570_v31 = vmin.f32 %v568_v30, 6.0  ;;  %v571_v35 = vmin.f32 %v569_v32, 6.0  ;;  %v1683_v32 = vld [vmem:[%s2236_s5 + $0x14] sm:$0xf] }
 0x13b   : > { %v572_v33 = vmul.f32 %v570_v31, %v544_v26  ;;  %v573_v36 = vmul.f32 %v571_v35, %v564_v27  ;;  %v1081_v26 = vadd.s32 15, %v2036_v48 }
 0x13d   : > { %v2001_v34 = vmul.f32 0.16666667, %v572_v33  ;;  %v2006_v37 = vmul.f32 0.16666667, %v573_v36  ;;  %v1237_v36 = vadd.s32 17, %v2036_v48 }
 0x13e   : > { %v1698_v48 = vld [vmem:[%s2236_s5 + $0x20] sm:$0xf] }
 0x13f   : > { %764 = vrot.lane.b32.xlu0 %v2001_v34, %s1843_s21  ;;  %635 = vrot.lane.b32.xlu2 %v2001_v34, %s1844_s22 }
 0x140   : > { %603 = vrot.lane.b32.xlu1 %v2001_v34, %s1845_s23 }
 0x147   : > { %850 = vrot.lane.b32.xlu0 %v2006_v37, %s1846_s24  ;;  %637 = vrot.lane.b32.xlu2 %v2006_v37, %s1844_s22  ;;  %s431_s22 = sand.u32 1, %s1832_s26  }
 0x148   : > { %605 = vrot.lane.b32.xlu1 %v2006_v37, %s1845_s23  ;;  %s1648_s23 = sshll.u32 %s431_s22, 4 }
 0x149   : > { %s433_s20 = scalar_lea.vmem [#allocation2], %s1648_s23  ;;  %s1798_s23 = scalar_lea.hbm %s2244_s13, 32 }
 0x14a   : > { %s1582_s27 = sshll.u32 %s433_s20, 4  ;;  %s1583_s27 = int_to_ptr.vmem [resolvable:$true] %s1582_s27 }
 0x14f   : > { %1073 = vrot.lane.b32.xlu0 %v2001_v34, %s1847_s30  ;;  %848 = vrot.lane.b32.xlu2 %v2001_v34, %s1846_s24  ;;  %s1725_s24 = sshll.u32 %s1943_s29, 4  ;;  %s1569_s29 = scalar_lea.sflag [#allocation3], %s431_s22 }
 0x150   : > { %766 = vrot.lane.b32.xlu1 %v2006_v37, %s1843_s21 }
 0x157   : > { %1153 = vrot.lane.b32.xlu0 %v2006_v37, %s1848_s15  ;;  %997 = vrot.lane.b32.xlu2 %v2006_v37, %s1849_s16 }
 0x158   : > { %995 = vrot.lane.b32.xlu1 %v2001_v34, %s1849_s16  ;;  %s1580_s16 = scalar_lea.hbm %s2244_s13, %s1725_s24 }
 0x15f   : > { %1310 = vperm.xlu0 %1775, %v1307_v38   ;;  %1151 = vrot.lane.b32.xlu2 %v2001_v34, %s1848_s15 }
 0x160   : > { %1075 = vrot.lane.b32.xlu1 %v2006_v37, %s1847_s30  ;;  %s1851_s30 = smov 124  }
 0x167   : > { %1231 = vrot.lane.b32.xlu2 %v2006_v37, %s1850_s17 }
 0x168   : > { %1229 = vrot.lane.b32.xlu1 %v2001_v34, %s1850_s17  ;;  %s1584_s17 = sshll.u32 %s1580_s16, 4  ;;  %s1585_s17 = int_to_ptr.hbm [resolvable:$true] %s1584_s17 }
 0x169   : > { %s1792_s21 = sshra.s32 %s1585_s17, 4  ;;  %s1793_s21 = int_to_ptr.hbm [resolvable:$true] %s1792_s21 }
 0x16a   : > { %s1794_s0 = scalar_lea.hbm %s1793_s21, 16  ;;  %p1799_p0 = scmp.lt.s32.totalorder %s1793_s21, %s2244_s13 }
 0x16b   : > { %p1795_p11 = scmp.ne.s32.totalorder %s1793_s21, %s1794_s0  ;;  %p1800_p1 = scmp.lt.s32.totalorder %s1798_s23, %s1794_s0 }
 0x16d   : > { %p1796_p12 = pnand %p1795_p11, %p1960_p5  ;;  %p1801_p2 = por %p1800_p1, %p1799_p0 }
 0x16f   : > { %p1797_p13 = pneg %p1796_p12 }
 0x171   : > { %p1802_p3 = pnand %p1801_p2, %p1797_p13 }
 0x199   : > { %v636_v41 = vpop.permute.xlu2 %635 }
 0x1a1   : > { %v638_v43 = vpop.permute.xlu2 %637 }
 0x1a2   : > { %v641_v45 = vsel %vm639_vm2, %v638_v43, %v636_v41  ;;  %v640_v46 = vsel %vm639_vm2, %v636_v41, %v638_v43  ;;  %vm787_vm2 = vmand %vm773_vm12, %vm785_vm13  ;;  %v1693_v43 = vld [vmem:[%s2236_s5 + $0x1c] sm:$0xf] }
 0x1a3   : > { %1662 = vmatpush.msk.msrb.mxu1 %vm455_vm0, %v640_v46  ;;  %v662_v47 = vsel %vm644_vm3, %v641_v45, 0.0  ;;  %vm1007_vm3 = vcmp.lt.s32.totalorder %v1003_v12, 256 }
 0x1a4   : > { %1660 = vmatpush.msk.msrb.mxu0 %vm455_vm0, %v662_v47  ;;  %1663 = vmatmul.msk.f32.vlgmr.msrb.gmra.mxu1 %vm451_vm1, %v1659_v44 }
 0x1a5   : > { %1661 = vmatmul.msk.f32.vlgmr.msrb.gmra.mxu0 %vm451_vm1, %v1659_v44 }
 0x1a9   : > { %v849_v56 = vpop.permute.xlu2 %848 }
 0x1b1   : > { %v765_v50 = vpop.permute.xlu0 %764  ;;  %v998_v9 = vpop.permute.xlu2 %997 }
 0x1b2   : > { %v604_v54 = vpop.permute.xlu1 %603 }
 0x1b9   : > { %v851_v59 = vpop.permute.xlu0 %850  ;;  %v1152_v22 = vpop.permute.xlu2 %1151 }
 0x1ba   : > { %v853_v60 = vsel %vm852_vm7, %v849_v56, %v851_v59  ;;  %v854_v61 = vsel %vm852_vm7, %v851_v59, %v849_v56  ;;  %v606_v62 = vpop.permute.xlu1 %605  ;;  %vm1013_vm7 = vmand %vm1007_vm3, %vm786_vm15 }
 0x1bb   : > { %v608_v1 = vsel %vm607_vm9, %v604_v54, %v606_v62  ;;  %v609_v2 = vsel %vm607_vm9, %v606_v62, %v604_v54  ;;  %v871_v4 = vsel %vm2050_vm8, %v854_v61, 0.0  ;;  %v872_v5 = vsel %vm621_vm10, %v853_v60, 0.0  ;;  %v1391_v62 = vld.sshfl [vmem:[#allocation1] sm:$0xff pattern:$0x75316420] }
 0x1bc   : > { %v632_v6 = vsel %vm622_vm11, %v609_v2, 0.0  ;;  %v633_v7 = vsel %vm621_vm10, %v608_v1, 0.0  ;;  %vm1163_vm8 = vcmp.lt.s32.totalorder %v1159_v19, 256  ;;  %vm1085_vm9 = vcmp.lt.s32.totalorder %v1081_v26, 256 }
 0x1bd   : > { %1664 = vmatpush.msk.msrb.mxu2 %vm455_vm0, %v632_v6  ;;  %1666 = vmatpush.msk.msrb.mxu3 %vm455_vm0, %v633_v7  ;;  %vm1077_vm11 = vcmp.lt.s32.totalorder %v2024_v40, 113  ;;  %vm1089_vm12 = vmand %vm1085_vm9, %vm621_vm10  ;;  %vm1241_vm10 = vcmp.lt.s32.totalorder %v1237_v36, 256  ;;  %v1328_v7 = vld [vmem:[%s2239_s8] sm:$0xf] }
 0x1be   : > { %1665 = vmatmul.msk.f32.vlgmr.msrb.gmra.mxu2 %vm451_vm1, %v634_v3  ;;  %1667 = vmatmul.msk.f32.vlgmr.msrb.gmra.mxu3 %vm451_vm1, %v634_v3  ;;  %v1384_v3 = vld [vmem:[%s2241_s10] sm:$0xf] }
 0x1bf   : > { %1674 = vmatpush.msk.msra.mxu2 %vm455_vm0, %v871_v4  ;;  %1676 = vmatpush.msk.msra.mxu3 %vm455_vm0, %v872_v5  ;;  %v2171_v4 = vld [vmem:[%s2242_s11] sm:$0xff] }
 0x1c0   : > { %1387 = vperm.xlu1 %1776, %v1384_v3   ;;  %1450 = vrot.lane.b32.xlu0 %v2171_v4, %s1851_s30 }
 0x1c1   : > { %v1074_v10 = vpop.permute.xlu0 %1073  ;;  %v1232_v44 = vpop.permute.xlu2 %1231  ;;  %1331 = vperm.xlu2 %1777, %v1328_v7  }
 0x1c2   : > { %v767_v11 = vpop.permute.xlu1 %766 }
 0x1c3   : > { %v769_v13 = vsel %vm768_vm14, %v765_v50, %v767_v11  ;;  %v770_v14 = vsel %vm768_vm14, %v767_v11, %v765_v50  ;;  %vm1247_vm14 = vmand %vm1241_vm10, %vm786_vm15 }
 0x1c4   : > { %v793_v16 = vsel %vm787_vm2, %v770_v14, 0.0  ;;  %v794_v17 = vsel %vm786_vm15, %v769_v13, 0.0  ;;  %v1548_v14 = vld [vmem:[%s2243_s12] sm:$0xff] }
 0x1c5   : > { %1669 = vmatpush.msk.msra.mxu0 %vm455_vm0, %v793_v16  ;;  %1671 = vmatpush.msk.msra.mxu1 %vm455_vm0, %v794_v17 }
 0x1c6   : > { %1670 = vmatmul.msk.f32.vlgmr.msra.gmra.mxu0 %vm451_vm1, %v1668_v15  ;;  %1672 = vmatmul.msk.f32.vlgmr.msra.gmra.mxu1 %vm451_vm1, %v1668_v15 }
 0x1c7   : > { %1675 = vmatmul.msk.f32.vlgmr.msra.gmra.mxu2 %vm451_vm1, %v1673_v18  ;;  %1677 = vmatmul.msk.f32.vlgmr.msra.gmra.mxu3 %vm451_vm1, %v1673_v18 }
 0x1c8   : > { %1679 = vmatpush.msk.msrb.mxu0 %vm455_vm0, %v2001_v34  ;;  %1681 = vmatpush.msk.msrb.mxu1 %vm455_vm0, %v2006_v37 }
 0x1c9   : > { %v1154_v23 = vpop.permute.xlu0 %1153  ;;  %1551 = vperm.xlu1 %1776, %v1548_v14  }
 0x1ca   : > { %v1157_v24 = vsel %vm1155_vm5, %v1154_v23, %v1152_v22  ;;  %v996_v25 = vpop.permute.xlu1 %995  ;;  %v1156_v34 = vsel %vm1155_vm5, %v1152_v22, %v1154_v23 }
 0x1cb   : > { %v1000_v27 = vsel %vm999_vm6, %v996_v25, %v998_v9  ;;  %v1001_v28 = vsel %vm999_vm6, %v998_v9, %v996_v25  ;;  %v1175_v33 = vsel %vm1163_vm8, %v1157_v24, 0.0 }
 0x1cc   : > { %v1018_v30 = vsel %vm785_vm13, %v1000_v27, 0.0  ;;  %v1019_v31 = vsel %vm1013_vm7, %v1001_v28, 0.0 }
 0x1cd   : > { %1684 = vmatpush.msk.msrb.mxu2 %vm455_vm0, %v1018_v30  ;;  %1686 = vmatpush.msk.msrb.mxu3 %vm455_vm0, %v1019_v31 }
 0x1ce   : > { %1680 = vmatmul.msk.f32.vlgmr.msrb.gmra.mxu0 %vm451_vm1, %v1678_v29  ;;  %1682 = vmatmul.msk.f32.vlgmr.msrb.gmra.mxu1 %vm451_vm1, %v1678_v29 }
 0x1cf   : > { %1685 = vmatmul.msk.f32.vlgmr.msrb.gmra.mxu2 %vm451_vm1, %v1683_v32  ;;  %1687 = vmatmul.msk.f32.vlgmr.msrb.gmra.mxu3 %vm451_vm1, %v1683_v32 }
 0x1d0   : > { %1694 = vmatpush.msk.msra.mxu2 %vm455_vm0, %v1156_v34  ;;  %1696 = vmatpush.msk.msra.mxu3 %vm455_vm0, %v1175_v33 }
 0x1d1   : > { %v1311_v29 = vpop.permute.xlu0 %1310 }
 0x1d2   : > { %v1076_v35 = vpop.permute.xlu1 %1075 }
 0x1d3   : > { %v1078_v37 = vsel %vm1077_vm11, %v1074_v10, %v1076_v35  ;;  %v1079_v38 = vsel %vm1077_vm11, %v1076_v35, %v1074_v10 }
 0x1d4   : > { %v1096_v41 = vsel %vm620_vm4, %v1078_v37, 0.0  ;;  %v1097_v42 = vsel %vm1089_vm12, %v1079_v38, 0.0  ;;  %vm1233_vm4 = vcmp.lt.s32.totalorder %v2024_v40, 111 }
 0x1d5   : > { %1689 = vmatpush.msk.msra.mxu0 %vm455_vm0, %v1096_v41  ;;  %1691 = vmatpush.msk.msra.mxu1 %vm455_vm0, %v1097_v42 }
 0x1d6   : > { %1690 = vmatmul.msk.f32.vlgmr.msra.gmra.mxu0 %vm451_vm1, %v1688_v39  ;;  %1692 = vmatmul.msk.f32.vlgmr.msra.gmra.mxu1 %vm451_vm1, %v1688_v39 }
 0x1d7   : > { %1695 = vmatmul.msk.f32.vlgmr.msra.gmra.mxu2 %vm451_vm1, %v1693_v43  ;;  %1697 = vmatmul.msk.f32.vlgmr.msra.gmra.mxu3 %vm451_vm1, %v1693_v43 }
 0x1da   : > { %v1230_v45 = vpop.permute.xlu1 %1229 }
 0x1db   : > { %v1234_v46 = vsel %vm1233_vm4, %v1230_v45, %v1232_v44  ;;  %v1235_v47 = vsel %vm1233_vm4, %v1232_v44, %v1230_v45  ;;  %v1327_v45 = vld [vmem:[%s2238_s7] sm:$0xf] }
 0x1dc   : > { %v1252_v49 = vsel %vm785_vm13, %v1234_v46, 0.0  ;;  %v1253_v50 = vsel %vm1247_vm14, %v1235_v47, 0.0 }
 0x1dd   : > { %1699 = vmatpush.msk.msrb.mxu0 %vm455_vm0, %v1252_v49  ;;  %1701 = vmatpush.msk.msrb.mxu1 %vm455_vm0, %v1253_v50 }
 0x1de   : > { %1700 = vmatmul.msk.f32.vlgmr.msrb.gmra.mxu0 %vm451_vm1, %v1698_v48  ;;  %1702 = vmatmul.msk.f32.vlgmr.msrb.gmra.mxu1 %vm451_vm1, %v1698_v48 }
 0x1df   : > { %1707 = vmatpush.msk.msra.mxu0 %vm455_vm0, %v1391_v62  ;;  %1709 = vmatpush.msk.msra.mxu1 %vm455_vm0, %v1392_v63 }
 0x1e6   : > { %1708 = vmatmul.msk.f32.vlgmr.msra.gmra.mxu0 %vm451_vm1, %v1383_v0  ;;  %1710 = vmatmul.msk.f32.vlgmr.msra.gmra.mxu1 %vm451_vm1, %v1383_v0 }
 0x221   : > { %v712_v51 = vpop.f32.mrf.mxu1 }
 0x222   : > { %v692_v40 = vpop.f32.mrf.mxu0 }
 0x232   : > { %v1388_v46 = vpop.permute.xlu1 %1387 }
 0x241   : > { %v741_v52 = vpop.f32.mrf.mxu2  ;;  %v761_v53 = vpop.f32.mrf.mxu3 }
 0x242   : > { %v742_v56 = vadd.f32 %v741_v52, %v692_v40  ;;  %v762_v57 = vadd.f32 %v761_v53, %v712_v51  ;;  %v1451_v52 = vpop.permute.xlu0 %1450  ;;  %v1332_v53 = vpop.permute.xlu2 %1331 }
 0x243   : > { %v823_v54 = vpop.f32.mrf.mxu0  ;;  %v843_v55 = vpop.f32.mrf.mxu1 }
 0x244   : > { %v846_v1 = vadd.f32 %v823_v54, %v742_v56  ;;  %v847_v2 = vadd.f32 %v843_v55, %v762_v57 }
 0x24a   : > { %v901_v58 = vpop.f32.mrf.mxu2  ;;  %v921_v59 = vpop.f32.mrf.mxu3 }
 0x24b   : > { %v970_v60 = vpop.f32.mrf.mxu0  ;;  %v990_v61 = vpop.f32.mrf.mxu1  ;;  %v924_v5 = vadd.f32 %v901_v58, %v846_v1  ;;  %v925_v6 = vadd.f32 %v921_v59, %v847_v2 }
 0x24d   : > { %v993_v10 = vadd.f32 %v970_v60, %v924_v5  ;;  %v994_v11 = vadd.f32 %v990_v61, %v925_v6  ;;  %v1552_v5 = vpop.permute.xlu1 %1551 }
 0x252   : > { %v1048_v8 = vpop.f32.mrf.mxu2  ;;  %v1068_v9 = vpop.f32.mrf.mxu3 }
 0x253   : > { %v1126_v12 = vpop.f32.mrf.mxu0  ;;  %v1146_v13 = vpop.f32.mrf.mxu1  ;;  %v1071_v15 = vadd.f32 %v1048_v8, %v993_v10  ;;  %v1072_v16 = vadd.f32 %v1068_v9, %v994_v11 }
 0x255   : > { %v1149_v17 = vadd.f32 %v1126_v12, %v1071_v15  ;;  %v1150_v18 = vadd.f32 %v1146_v13, %v1072_v16 }
 0x25a   : > { %v1204_v19 = vpop.f32.mrf.mxu2  ;;  %v1224_v22 = vpop.f32.mrf.mxu3 }
 0x25b   : > { %v1227_v23 = vadd.f32 %v1204_v19, %v1149_v17  ;;  %v1228_v24 = vadd.f32 %v1224_v22, %v1150_v18  ;;  %v1282_v25 = vpop.f32.mrf.mxu0  ;;  %v1302_v26 = vpop.f32.mrf.mxu1 }
 0x25d   : > { %v1305_v27 = vadd.f32 %v1282_v25, %v1227_v23  ;;  %v1306_v28 = vadd.f32 %v1302_v26, %v1228_v24 }
 0x25f   : > { %v1313_v30 = vadd.f32 %v1311_v29, %v1305_v27  ;;  %v1314_v31 = vadd.f32 %v1311_v29, %v1306_v28 }
 0x261   : > { %v1315_v32 = vadd.f32 3.0, %v1313_v30  ;;  %v1316_v33 = vadd.f32 3.0, %v1314_v31 }
 0x263   : > { %v1317_v34 = vmax.f32 %v1315_v32, 0.0  ;;  %v1318_v35 = vmax.f32 %v1316_v33, 0.0  ;;  %v1417_v47 = vpop.f32.mrf.mxu0  ;;  %v1437_v48 = vpop.f32.mrf.mxu1 }
 0x264   : > { %v1418_v49 = vadd.f32 %v1417_v47, %v1388_v46  ;;  %v1438_v50 = vadd.f32 %v1437_v48, %v1388_v46 }
 0x265   : > { %v1319_v36 = vmin.f32 %v1317_v34, 6.0  ;;  %v1320_v37 = vmin.f32 %v1318_v35, 6.0 }
 0x266   : > { %v1445_v40 = vmul.f32 0.1, %v1438_v50 }
 0x267   : > { %v1321_v38 = vmul.f32 %v1319_v36, %v1313_v30  ;;  %v1322_v39 = vmul.f32 %v1320_v37, %v1314_v31 }
 0x268   : > { %v1447_v51 = vmax.f32 %v1438_v50, %v1445_v40 }
 0x269   : > { %v1323_v41 = vmul.f32 0.16666667, %v1321_v38  ;;  %v1324_v42 = vmul.f32 0.16666667, %v1322_v39 }
 0x26b   : > { %v1325_v43 = vadd.f32 %v1323_v41, %v1988_v20  ;;  %v1326_v44 = vadd.f32 %v1324_v42, %v1990_v21  ;;  %v1444_v20 = vmul.f32 0.1, %v1418_v49 }
 0x26d   : > { %1703 = vmatpush.msk.msrb.mxu2 %vm455_vm0, %v1325_v43  ;;  %1705 = vmatpush.msk.msrb.mxu3 %vm455_vm0, %v1326_v44  ;;  %v1446_v21 = vmax.f32 %v1418_v49, %v1444_v20 }
 0x26e   : > { %1704 = vmatmul.msk.f32.vlgmr.msrb.gmra.mxu2 %vm451_vm1, %v1327_v45  ;;  %1706 = vmatmul.msk.f32.vlgmr.msrb.gmra.mxu3 %vm451_vm1, %v1327_v45 }
 0x26f   : > { %1711 = vmatpush.msk.msra.mxu2 %vm455_vm0, %v1446_v21  ;;  %1713 = vmatpush.msk.msra.mxu3 %vm455_vm0, %v1447_v51 }
 0x276   : > { %1712 = vmatmul.msk.f32.vlgmr.msra.gmra.mxu2 %vm451_vm1, %v1451_v52  ;;  %1714 = vmatmul.msk.f32.vlgmr.msra.gmra.mxu3 %vm451_vm1, %v1451_v52 }
 0x2f1   : > { %v1360_v54 = vpop.f32.mrf.mxu2  ;;  %v1380_v55 = vpop.f32.mrf.mxu3 }
 0x2f2   : > { %v1361_v56 = vadd.f32 %v1360_v54, %v1332_v53  ;;  %v1381_v57 = vadd.f32 %v1380_v55, %v1332_v53 }
 0x2f4   : > { %v1440_v58 = vmul.f32 0.1, %v1361_v56  ;;  %v1441_v59 = vmul.f32 0.1, %v1381_v57 }
 0x2f6   : > { %v1442_v60 = vmax.f32 %v1361_v56, %v1440_v58  ;;  %v1443_v61 = vmax.f32 %v1381_v57, %v1441_v59 }
 0x2f8   : > { %1715 = vmatpush.msk.msrb.mxu0 %vm455_vm0, %v1442_v60  ;;  %1717 = vmatpush.msk.msrb.mxu1 %vm455_vm0, %v1443_v61 }
 0x2f9   : > { %1716 = vmatmul.msk.f32.vlgmr.msrb.gmra.mxu0 %vm451_vm1, %v2171_v4  ;;  %1718 = vmatmul.msk.f32.vlgmr.msrb.gmra.mxu1 %vm451_vm1, %v2171_v4  ;;  %v1477_v62 = vpop.f32.mrf.mxu2  ;;  %v1497_v63 = vpop.f32.mrf.mxu3 }
 0x376   : > { %v1525_v0 = vpop.f32.mrf.mxu0  ;;  %v1545_v1 = vpop.f32.mrf.mxu1 }
 0x377   : > { %v1526_v2 = vadd.f32 %v1525_v0, %v1477_v62  ;;  %v1546_v3 = vadd.f32 %v1545_v1, %v1497_v63 }
 0x379   : > { %v1554_v6 = vadd.f32 %v1552_v5, %v1526_v2  ;;  %v1555_v7 = vadd.f32 %v1552_v5, %v1546_v3 }
 0x37b   : > { %v1556_v8 = vadd.f32 3.0, %v1554_v6  ;;  %v1557_v9 = vadd.f32 3.0, %v1555_v7 }
 0x37d   : > { %v1558_v10 = vmax.f32 %v1556_v8, 0.0  ;;  %v1559_v11 = vmax.f32 %v1557_v9, 0.0 }
 0x37f   : > { %v1560_v4 = vmin.f32 %v1558_v10, 6.0  ;;  %v1561_v12 = vmin.f32 %v1559_v11, 6.0 }
 0x381   : > { %v1562_v13 = vmul.f32 %v1560_v4, %v1554_v6  ;;  %v1563_v14 = vmul.f32 %v1561_v12, %v1555_v7 }
 0x383   : > { %v1564_v15 = vmul.f32 0.16666667, %v1562_v13  ;;  %v1565_v16 = vmul.f32 0.16666667, %v1563_v14 }
 0x385   : > { %1566 = vst [vmem:[%s433_s20] sm:$0xff] %v1564_v15 }
 0x386   : > { %1567 = vst [vmem:[%s433_s20 + $0x8] sm:$0xff] %v1565_v16 }
 0x387   : > { %1805 = shalt.err (!%p1802_p3)
}
 0x388   : > { %1726 = dma.vmem_to_hbm [thread:$0]  (%p1960_p5), %s1583_s27, 256, %s1585_s17, %s1569_s29  }
 0x389 PF: > { %p1732_p4 = scmp.ge.s32.totalorder %s1840_s28, 2  ;;  %s1596_s22 = sand.u32 1, %s1828_s25  }
 0x38a   : > { %s1597_s20 = scalar_lea.sflag [#allocation3], %s1596_s22 }
 0x38b   : > { %p1729_p7 = pnand %p1732_p4, %p1964_p6 }
 0x38d   : > { %p1730_p8 = pneg %p1729_p7 }
 0x38f   : > { %1823 = dma.done.wait (%p1730_p8), %s1597_s20, 256  }
 0x390   : > { %1825 = vsyncadd (%p1730_p8), %s1597_s20, 4294967040  ;;  %s2254_s0 = sld [smem:[#allocation5_spill]]  ;;  %p23_p9 = scmp.ge.s32.totalorder %s1947_s14, 4  }
 0x391   : > { %s2255_s27 = sld [smem:[#allocation6_spill]]  ;;  %s2256_s25 = smov %s1832_s26 }
 0x392   : > { %s2258_s28 = smov %s1947_s14  ;;  %25 = sbr.rel (!%p23_p9) target bundleno = 5 (0x5), region = 115 }
 0x396   : > { %s2257_s26 = smov %s2254_s0 }
 0x397   :  { %1603 = vsyncpa [#allocation3], 1 }
 0x398   :  { %1605 = vsyncpa [#allocation3 + $0x1], 1 }

</bundles_post_ra>
